<compile_context>
chip_gen: v7x
topology: tpu7x:2x2x1
jax: 0.10.0
libtpu: 0.0.40
codegen_flags: <defaults>
</compile_context>

<pallas_src>
import functools
import math

import jax
import jax.numpy as jnp
from jax.experimental import pallas as pl
from jax.experimental.pallas import tpu as pltpu


def _encoder_layer_kernel(Bt, S, H, d_k,
                          x_ref, mask_ref,
                          w_qkv_ref, b_qkv_ref, wo_ref,
                          w1_ref, b1_ref, w2_ref, vec_ref,
                          out_ref):
    f32 = jnp.float32
    bf16 = jnp.bfloat16
    D = H * d_k
    R = Bt * S                      # rows (batch * seq) handled by this grid step

    x = x_ref[...]                  # (R, D) f32
    mask = mask_ref[...]            # (R, 1) f32

    g_att = vec_ref[0:1, :]
    b_att = vec_ref[1:2, :]
    g_aff = vec_ref[2:3, :]
    b_aff = vec_ref[3:4, :]
    bo    = vec_ref[4:5, :]
    b2    = vec_ref[5:6, :]

    def layer_norm(t, gamma, beta):
        mu = jnp.mean(t, axis=-1, keepdims=True)
        c = t - mu
        var = jnp.mean(c * c, axis=-1, keepdims=True)
        return c * jax.lax.rsqrt(var + 1e-5) * gamma + beta

    # ---------------- self-attention sublayer ----------------
    x_norm = layer_norm(x * mask, g_att, b_att)

    # Fused QKV projection on flattened activations: one (R,D)@(D,3D) matmul.
    qkv = jnp.dot(x_norm.astype(bf16), w_qkv_ref[...],
                  preferred_element_type=f32) + b_qkv_ref[...]            # (R, 3D) f32

    # Single head-split transpose (w_qkv columns pre-laid-out as (type, head, d_k)).
    qkv = qkv.astype(bf16).reshape(R, 3 * H, d_k)
    qkv = pltpu.einshape("sgd->gsd", qkv)                                 # (3H, R, d_k)
    q = qkv[0 * H:1 * H].reshape(H * Bt, S, d_k)
    k = qkv[1 * H:2 * H].reshape(H * Bt, S, d_k)
    v = qkv[2 * H:3 * H].reshape(H * Bt, S, d_k)

    # Head/batch-batched attention, scores in f32.
    scores = jnp.einsum("gqd,gkd->gqk", q, k,
                        preferred_element_type=f32) * (1.0 / math.sqrt(d_k))

    # Additive mask over *query* rows (broadcast over heads and keys); matches the
    # PyTorch masked_fill(mask==0, -1e9) semantics for a 0/1 mask without compare+select.
    madd = (mask - 1.0) * 1e9                                             # (R, 1)
    madd = jnp.broadcast_to(madd.reshape(1, R, 1), (H, R, 1)).reshape(H * Bt, S, 1)
    scores = scores + madd

    # TODO(synk): for long sequences this (H*B, S, S) block should be query-tiled
    # (online softmax) to bound VMEM on v7x; unnecessary at these shapes.
    scores = scores - jnp.max(scores, axis=-1, keepdims=True)
    p = jnp.exp(scores)
    # approx reciprocal runs on the EUP slot; ~1e-3 relative error vs. an exact divide.
    p = p * pl.reciprocal(jnp.sum(p, axis=-1, keepdims=True), approx=True)

    att = jnp.einsum("gqk,gkd->gqd", p.astype(bf16), v,
                     preferred_element_type=f32)                          # (H*Bt, S, d_k)
    # Cast to bf16 *before* the head-merge transpose: half the relayout bytes.
    att = att.astype(bf16).reshape(H, R, d_k)
    att = pltpu.einshape("hsd->shd", att).reshape(R, D)                   # (R, D) bf16
    att = jnp.dot(att, wo_ref[...], preferred_element_type=f32) + bo

    # TODO(synk): nn.Dropout layers are identity in this eval-mode forward.
    x1 = x + att

    # ---------------- feed-forward sublayer ----------------
    x1_norm = layer_norm(x1 * mask, g_aff, b_aff)
    hid = jnp.dot(x1_norm.astype(bf16), w1_ref[...],
                  preferred_element_type=f32) + b1_ref[...]
    hid = jnp.maximum(hid, 0.0)
    ff = jnp.dot(hid.astype(bf16), w2_ref[...],
                 preferred_element_type=f32) + b2

    out_ref[...] = (x1 + ff).astype(out_ref.dtype)


def encoder_layer_pallas(x, mask, params, num_head):
    B, S, D = x.shape
    H = num_head
    d_k = D // H
    FF = params["w1"].shape[0]
    f32, bf16 = jnp.float32, jnp.bfloat16

    # Batch fusion: flatten (B, S, D) -> (B*S, D) so every dense matmul sees M = rows
    # (and the blocks are lane-dense as soon as D is a multiple of 128).
    x2 = x.reshape(B * S, D).astype(f32)
    m2 = mask.reshape(B * S, 1).astype(f32)

    # At most two row blocks -> two "parallel" grid steps (both v7x TensorCores busy);
    # fall back to a single fused block when B is odd or the half-block breaks (8,·) tiling.
    nb = 2 if (B >= 2 and B % 2 == 0 and ((B // 2) * S) % 8 == 0) else 1
    Bt = B // nb
    rows = Bt * S

    # Fused QKV weight, columns ordered (type, head, d_k) -> one head-split transpose in
    # the kernel.  Matmul weights pre-cast to bf16 (half the weight DMA bytes).
    w_qkv = jnp.concatenate([params["wq"].T, params["wk"].T, params["wv"].T],
                            axis=1).astype(bf16)                           # (D, 3D)
    b_qkv = jnp.concatenate([params["bq"], params["bk"], params["bv"]]
                            ).reshape(1, 3 * D).astype(f32)                # (1, 3D)
    wo = params["wo"].T.astype(bf16)                                       # (D, D)
    w1 = params["w1"].T.astype(bf16)                                       # (D, FF)
    b1 = params["b1"].reshape(1, FF).astype(f32)                           # (1, FF)
    w2 = params["w2"].T.astype(bf16)                                       # (FF, D)
    # Pack every (D,)-wide f32 vector into one (6, D) array: one spec / one DMA.
    vecs = jnp.stack([params["g_att"], params["b_att"],
                      params["g_aff"], params["b_aff"],
                      params["bo"], params["b2"]], axis=0).astype(f32)     # (6, D)

    weights = [w_qkv, b_qkv, wo, w1, b1, w2, vecs]
    kernel = functools.partial(_encoder_layer_kernel, Bt, S, H, d_k)

    # ---- VMEM budget: weights single-buffered, activations double-buffered ----
    weight_bytes = sum(int(p.size) * p.dtype.itemsize for p in weights)
    act_bytes = 2 * 2 * rows * D * 4 + 2 * rows * 4
    scratch_bytes = (rows * 3 * D * 6 + 3 * H * Bt * S * S * 4
                     + 2 * rows * D * 4 + 2 * rows * FF * 4)
    vmem_limit = int(min(max(2 * (weight_bytes + act_bytes + scratch_bytes), 8 << 20),
                         64 << 20))

    # Advisory cost estimate for XLA's scheduler.
    flops = 2 * B * S * (4 * D * D + 2 * D * FF) + 4 * B * H * S * S * d_k
    transcendentals = B * H * S * S + B * H * S + 4 * B * S
    bytes_accessed = 2 * B * S * D * 4 + B * S * 4 + weight_bytes

    def build_call(single_buffer_weights):
        if single_buffer_weights:
            def wspec(shape):
                return pl.BlockSpec(shape, lambda i: (0, 0),
                                    pipeline_mode=pl.Buffered(1))
        else:
            def wspec(shape):
                return pl.BlockSpec(shape, lambda i: (0, 0))
        in_specs = [pl.BlockSpec((rows, D), lambda i: (i, 0)),
                    pl.BlockSpec((rows, 1), lambda i: (i, 0))]
        in_specs += [wspec(p.shape) for p in weights]
        out_specs = pl.BlockSpec((rows, D), lambda i: (i, 0))
        return pl.pallas_call(
            kernel,
            out_shape=jax.ShapeDtypeStruct((B * S, D), x.dtype),
            grid_spec=pltpu.PrefetchScalarGridSpec(
                num_scalar_prefetch=0,
                grid=(nb,),
                in_specs=in_specs,
                out_specs=out_specs,
            ),
            compiler_params=pltpu.CompilerParams(
                dimension_semantics=("parallel",),
                vmem_limit_bytes=vmem_limit,
            ),
            cost_estimate=pl.CostEstimate(flops=flops,
                                          transcendentals=transcendentals,
                                          bytes_accessed=bytes_accessed),
        )

    try:
        out = build_call(single_buffer_weights=True)(x2, m2, *weights)
    except Exception:
        # Fallback for jax versions that reject pl.Buffered(1) single-buffering.
        out = build_call(single_buffer_weights=False)(x2, m2, *weights)
    return out.reshape(B, S, D)


def encoder_layer_ref(x, mask, params, num_head):
    """Pure-JAX f32 reference mirroring the PyTorch forward (eval mode)."""
    B, S, D = x.shape
    d_k = D // num_head

    def ln(v, g, b):
        mu = v.mean(-1, keepdims=True)
        var = ((v - mu) ** 2).mean(-1, keepdims=True)
        return (v - mu) / jnp.sqrt(var + 1e-5) * g + b

    def lin(v, w, b):
        return v @ w.T + b

    xn = ln(x * mask, params["g_att"], params["b_att"])
    q = lin(xn, params["wq"], params["bq"]).reshape(B, S, num_head, d_k).transpose(0, 2, 1, 3)
    k = lin(xn, params["wk"], params["bk"]).reshape(B, S, num_head, d_k).transpose(0, 2, 1, 3)
    v = lin(xn, params["wv"], params["bv"]).reshape(B, S, num_head, d_k).transpose(0, 2, 1, 3)
    scores = jnp.einsum("bhqd,bhkd->bhqk", q, k) / math.sqrt(d_k)
    m = mask[:, None]                    # (B,1,S,1)
    scores = jnp.where(m == 0, -1000000000.0, scores)
    p = jax.nn.softmax(scores, axis=-1)
    att = jnp.einsum("bhqk,bhkd->bhqd", p, v).transpose(0, 2, 1, 3).reshape(B, S, D)
    att = lin(att, params["wo"], params["bo"])
    x1 = x + att
    xn2 = ln(x1 * mask, params["g_aff"], params["b_aff"])
    h = jax.nn.relu(lin(xn2, params["w1"], params["b1"]))
    return x1 + lin(h, params["w2"], params["b2"])


if __name__ == "__main__":
    B, S, D, H, FF = 2, 8, 32, 4, 64

    key = jax.random.PRNGKey(0)
    keys = jax.random.split(key, 16)

    def init(k, shape, scale=0.1):
        return scale * jax.random.normal(k, shape, jnp.float32)

    params = {
        "wq": init(keys[0], (D, D)), "bq": init(keys[1], (D,)),
        "wk": init(keys[2], (D, D)), "bk": init(keys[3], (D,)),
        "wv": init(keys[4], (D, D)), "bv": init(keys[5], (D,)),
        "wo": init(keys[6], (D, D)), "bo": init(keys[7], (D,)),
        "g_att": jnp.ones((D,), jnp.float32), "b_att": jnp.zeros((D,), jnp.float32),
        "g_aff": jnp.ones((D,), jnp.float32), "b_aff": jnp.zeros((D,), jnp.float32),
        "w1": init(keys[8], (FF, D)), "b1": init(keys[9], (FF,)),
        "w2": init(keys[10], (D, FF)), "b2": init(keys[11], (D,)),
    }

    x = jax.random.normal(keys[12], (B, S, D), jnp.float32)
    lengths = jnp.array([S, 5], dtype=jnp.int32)
    mask = (jnp.arange(S)[None, :] < lengths[:, None]).astype(jnp.float32)[..., None]  # (B,S,1)

    out = encoder_layer_pallas(x, mask, params, H)
    out = jax.block_until_ready(out)

    ref = encoder_layer_ref(x, mask, params, H)
    assert out.shape == (B, S, D)
    # Tolerance accounts for bf16 matmul operands (f32 accumulation) and approx reciprocal.
    err = float(jnp.max(jnp.abs(out - ref)))
    assert jnp.allclose(out, ref, atol=1e-2, rtol=1e-2), err
    print("KERNEL_OK")
</pallas_src>

<mosaic_0001>
module attributes {stable_mosaic.version = 11 : i64} {
  func.func @_encoder_layer_kernel(%arg0: i32, %arg1: memref<8x32xf32, #tpu.memory_space<vmem>>, %arg2: memref<8x1xf32, #tpu.memory_space<vmem>>, %arg3: memref<32x96xbf16, #tpu.memory_space<vmem>>, %arg4: memref<1x96xf32, #tpu.memory_space<vmem>>, %arg5: memref<32x32xbf16, #tpu.memory_space<vmem>>, %arg6: memref<32x64xbf16, #tpu.memory_space<vmem>>, %arg7: memref<1x64xf32, #tpu.memory_space<vmem>>, %arg8: memref<64x32xbf16, #tpu.memory_space<vmem>>, %arg9: memref<6x32xf32, #tpu.memory_space<vmem>>, %arg10: memref<8x32xf32, #tpu.memory_space<vmem>>) attributes {dimension_semantics = [#tpu.dimension_semantics<parallel>], iteration_bounds = array<i64: 2>, scalar_prefetch = 0 : i64, scratch_operands = 0 : i64, tpu.core_type = #tpu.core_type<tc>, window_params = [{transform_indices = @transform_0, window_bounds = array<i64: 8, 32>}, {transform_indices = @transform_1, window_bounds = array<i64: 8, 1>}, {pipeline_mode = #tpu.pipeline_mode<synchronous>, transform_indices = @transform_2, window_bounds = array<i64: 32, 96>}, {pipeline_mode = #tpu.pipeline_mode<synchronous>, transform_indices = @transform_3, window_bounds = array<i64: 1, 96>}, {pipeline_mode = #tpu.pipeline_mode<synchronous>, transform_indices = @transform_4, window_bounds = array<i64: 32, 32>}, {pipeline_mode = #tpu.pipeline_mode<synchronous>, transform_indices = @transform_5, window_bounds = array<i64: 32, 64>}, {pipeline_mode = #tpu.pipeline_mode<synchronous>, transform_indices = @transform_6, window_bounds = array<i64: 1, 64>}, {pipeline_mode = #tpu.pipeline_mode<synchronous>, transform_indices = @transform_7, window_bounds = array<i64: 64, 32>}, {pipeline_mode = #tpu.pipeline_mode<synchronous>, transform_indices = @transform_8, window_bounds = array<i64: 6, 32>}, {transform_indices = @transform_9, window_bounds = array<i64: 8, 32>}]} {
    %c0 = arith.constant 0 : index
    %c0_0 = arith.constant 0 : index
    %0 = vector.load %arg1[%c0, %c0_0] : memref<8x32xf32, #tpu.memory_space<vmem>>, vector<8x32xf32>
    %c0_1 = arith.constant 0 : index
    %c0_2 = arith.constant 0 : index
    %1 = vector.load %arg2[%c0_1, %c0_2] : memref<8x1xf32, #tpu.memory_space<vmem>>, vector<8x1xf32>
    %c0_3 = arith.constant 0 : index
    %c0_4 = arith.constant 0 : index
    %2 = vector.load %arg9[%c0_3, %c0_4] : memref<6x32xf32, #tpu.memory_space<vmem>>, vector<1x32xf32>
    %c1 = arith.constant 1 : index
    %c0_5 = arith.constant 0 : index
    %3 = vector.load %arg9[%c1, %c0_5] : memref<6x32xf32, #tpu.memory_space<vmem>>, vector<1x32xf32>
    %c2 = arith.constant 2 : index
    %c0_6 = arith.constant 0 : index
    %4 = vector.load %arg9[%c2, %c0_6] : memref<6x32xf32, #tpu.memory_space<vmem>>, vector<1x32xf32>
    %c3 = arith.constant 3 : index
    %c0_7 = arith.constant 0 : index
    %5 = vector.load %arg9[%c3, %c0_7] : memref<6x32xf32, #tpu.memory_space<vmem>>, vector<1x32xf32>
    %c4 = arith.constant 4 : index
    %c0_8 = arith.constant 0 : index
    %6 = vector.load %arg9[%c4, %c0_8] : memref<6x32xf32, #tpu.memory_space<vmem>>, vector<1x32xf32>
    %c5 = arith.constant 5 : index
    %c0_9 = arith.constant 0 : index
    %7 = vector.load %arg9[%c5, %c0_9] : memref<6x32xf32, #tpu.memory_space<vmem>>, vector<1x32xf32>
    %8 = vector.broadcast %1 : vector<8x1xf32> to vector<8x32xf32>
    %9 = arith.mulf %0, %8 : vector<8x32xf32>
    %cst = arith.constant dense<0.000000e+00> : vector<8xf32>
    %10 = vector.multi_reduction <add>, %9, %cst [1] : vector<8x32xf32> to vector<8xf32>
    %11 = vector.shape_cast %10 : vector<8xf32> to vector<8x1xf32>
    %cst_10 = arith.constant 3.200000e+01 : f32
    %12 = vector.broadcast %cst_10 : f32 to vector<8x1xf32>
    %13 = arith.divf %11, %12 : vector<8x1xf32>
    %14 = vector.broadcast %13 : vector<8x1xf32> to vector<8x32xf32>
    %15 = arith.subf %9, %14 : vector<8x32xf32>
    %16 = arith.mulf %15, %15 : vector<8x32xf32>
    %cst_11 = arith.constant dense<0.000000e+00> : vector<8xf32>
    %17 = vector.multi_reduction <add>, %16, %cst_11 [1] : vector<8x32xf32> to vector<8xf32>
    %18 = vector.shape_cast %17 : vector<8xf32> to vector<8x1xf32>
    %cst_12 = arith.constant 3.200000e+01 : f32
    %19 = vector.broadcast %cst_12 : f32 to vector<8x1xf32>
    %20 = arith.divf %18, %19 : vector<8x1xf32>
    %cst_13 = arith.constant 9.99999974E-6 : f32
    %21 = vector.broadcast %cst_13 : f32 to vector<8x1xf32>
    %22 = arith.addf %20, %21 : vector<8x1xf32>
    %23 = math.rsqrt %22 : vector<8x1xf32>
    %24 = vector.broadcast %23 : vector<8x1xf32> to vector<8x32xf32>
    %25 = arith.mulf %15, %24 : vector<8x32xf32>
    %26 = vector.broadcast %2 : vector<1x32xf32> to vector<8x32xf32>
    %27 = arith.mulf %25, %26 : vector<8x32xf32>
    %28 = vector.broadcast %3 : vector<1x32xf32> to vector<8x32xf32>
    %29 = arith.addf %27, %28 : vector<8x32xf32>
    %30 = arith.truncf %29 : vector<8x32xf32> to vector<8x32xbf16>
    %c0_14 = arith.constant 0 : index
    %c0_15 = arith.constant 0 : index
    %31 = vector.load %arg3[%c0_14, %c0_15] : memref<32x96xbf16, #tpu.memory_space<vmem>>, vector<32x96xbf16>
    %cst_16 = arith.constant dense<0.000000e+00> : vector<8x96xf32>
    %32 = tpu.matmul %30, %31, %cst_16 {dimension_numbers = #tpu.dot_dimension_numbers<[1], [0], [0], [1], [0, 0, 1, 1], [], []>} : vector<8x32xbf16>, vector<32x96xbf16>, vector<8x96xf32> -> vector<8x96xf32>
    %c0_17 = arith.constant 0 : index
    %c0_18 = arith.constant 0 : index
    %33 = vector.load %arg4[%c0_17, %c0_18] : memref<1x96xf32, #tpu.memory_space<vmem>>, vector<1x96xf32>
    %34 = vector.broadcast %33 : vector<1x96xf32> to vector<8x96xf32>
    %35 = arith.addf %32, %34 : vector<8x96xf32>
    %36 = arith.truncf %35 : vector<8x96xf32> to vector<8x96xbf16>
    %37 = vector.shape_cast %36 : vector<8x96xbf16> to vector<8x12x8xbf16>
    %38 = tpu.transpose %37, [1, 0, 2] : vector<8x12x8xbf16> -> vector<12x8x8xbf16>
    %39 = vector.extract_strided_slice %38 {offsets = [0, 0, 0], sizes = [4, 8, 8], strides = [1, 1, 1]} : vector<12x8x8xbf16> to vector<4x8x8xbf16>
    %40 = vector.extract_strided_slice %38 {offsets = [4, 0, 0], sizes = [4, 8, 8], strides = [1, 1, 1]} : vector<12x8x8xbf16> to vector<4x8x8xbf16>
    %41 = vector.extract_strided_slice %38 {offsets = [8, 0, 0], sizes = [4, 8, 8], strides = [1, 1, 1]} : vector<12x8x8xbf16> to vector<4x8x8xbf16>
    "tpu.trace_start"() <{level = 10 : i32, message = "gqd,gkd->gqk"}> : () -> ()
    %cst_19 = arith.constant dense<0.000000e+00> : vector<4x8x8xf32>
    %42 = tpu.matmul %39, %40, %cst_19 {dimension_numbers = #tpu.dot_dimension_numbers<[2], [2], [1], [1], [0, 0, 0, 1, 1, 1], [0], [0]>} : vector<4x8x8xbf16>, vector<4x8x8xbf16>, vector<4x8x8xf32> -> vector<4x8x8xf32>
    "tpu.trace_stop"() : () -> ()
    %cst_20 = arith.constant 0.353553385 : f32
    %43 = vector.broadcast %cst_20 : f32 to vector<4x8x8xf32>
    %44 = arith.mulf %42, %43 : vector<4x8x8xf32>
    %cst_21 = arith.constant 1.000000e+00 : f32
    %45 = vector.broadcast %cst_21 : f32 to vector<8x1xf32>
    %46 = arith.subf %1, %45 : vector<8x1xf32>
    %cst_22 = arith.constant 1.000000e+09 : f32
    %47 = vector.broadcast %cst_22 : f32 to vector<8x1xf32>
    %48 = arith.mulf %46, %47 : vector<8x1xf32>
    %49 = vector.shape_cast %48 : vector<8x1xf32> to vector<1x8x1xf32>
    %50 = vector.shape_cast %49 : vector<1x8x1xf32> to vector<1x8x1xf32>
    %51 = vector.broadcast %50 : vector<1x8x1xf32> to vector<4x8x1xf32>
    %52 = vector.broadcast %51 : vector<4x8x1xf32> to vector<4x8x8xf32>
    %53 = arith.addf %44, %52 : vector<4x8x8xf32>
    %cst_23 = arith.constant dense<0xFF800000> : vector<4x8xf32>
    %54 = vector.multi_reduction <maximumf>, %53, %cst_23 [2] : vector<4x8x8xf32> to vector<4x8xf32>
    %55 = vector.shape_cast %54 : vector<4x8xf32> to vector<4x8x1xf32>
    %56 = vector.broadcast %55 : vector<4x8x1xf32> to vector<4x8x8xf32>
    %57 = arith.subf %53, %56 : vector<4x8x8xf32>
    %58 = math.exp %57 : vector<4x8x8xf32>
    %cst_24 = arith.constant dense<0.000000e+00> : vector<4x8xf32>
    %59 = vector.multi_reduction <add>, %58, %cst_24 [2] : vector<4x8x8xf32> to vector<4x8xf32>
    %60 = vector.shape_cast %59 : vector<4x8xf32> to vector<4x8x1xf32>
    %61 = tpu.reciprocal %60 {approx = true} : vector<4x8x1xf32> -> vector<4x8x1xf32>
    %62 = vector.broadcast %61 : vector<4x8x1xf32> to vector<4x8x8xf32>
    %63 = arith.mulf %58, %62 : vector<4x8x8xf32>
    %64 = arith.truncf %63 : vector<4x8x8xf32> to vector<4x8x8xbf16>
    "tpu.trace_start"() <{level = 10 : i32, message = "gqk,gkd->gqd"}> : () -> ()
    %cst_25 = arith.constant dense<0.000000e+00> : vector<4x8x8xf32>
    %65 = tpu.matmul %64, %41, %cst_25 {dimension_numbers = #tpu.dot_dimension_numbers<[2], [1], [1], [2], [0, 0, 0, 1, 1, 2], [0], [0]>} : vector<4x8x8xbf16>, vector<4x8x8xbf16>, vector<4x8x8xf32> -> vector<4x8x8xf32>
    "tpu.trace_stop"() : () -> ()
    %66 = arith.truncf %65 : vector<4x8x8xf32> to vector<4x8x8xbf16>
    %67 = tpu.transpose %66, [1, 0, 2] : vector<4x8x8xbf16> -> vector<8x4x8xbf16>
    %68 = vector.shape_cast %67 : vector<8x4x8xbf16> to vector<8x32xbf16>
    %c0_26 = arith.constant 0 : index
    %c0_27 = arith.constant 0 : index
    %69 = vector.load %arg5[%c0_26, %c0_27] : memref<32x32xbf16, #tpu.memory_space<vmem>>, vector<32x32xbf16>
    %cst_28 = arith.constant dense<0.000000e+00> : vector<8x32xf32>
    %70 = tpu.matmul %68, %69, %cst_28 {dimension_numbers = #tpu.dot_dimension_numbers<[1], [0], [0], [1], [0, 0, 1, 1], [], []>} : vector<8x32xbf16>, vector<32x32xbf16>, vector<8x32xf32> -> vector<8x32xf32>
    %71 = vector.broadcast %6 : vector<1x32xf32> to vector<8x32xf32>
    %72 = arith.addf %70, %71 : vector<8x32xf32>
    %73 = arith.addf %0, %72 : vector<8x32xf32>
    %74 = vector.broadcast %1 : vector<8x1xf32> to vector<8x32xf32>
    %75 = arith.mulf %73, %74 : vector<8x32xf32>
    %cst_29 = arith.constant dense<0.000000e+00> : vector<8xf32>
    %76 = vector.multi_reduction <add>, %75, %cst_29 [1] : vector<8x32xf32> to vector<8xf32>
    %77 = vector.shape_cast %76 : vector<8xf32> to vector<8x1xf32>
    %cst_30 = arith.constant 3.200000e+01 : f32
    %78 = vector.broadcast %cst_30 : f32 to vector<8x1xf32>
    %79 = arith.divf %77, %78 : vector<8x1xf32>
    %80 = vector.broadcast %79 : vector<8x1xf32> to vector<8x32xf32>
    %81 = arith.subf %75, %80 : vector<8x32xf32>
    %82 = arith.mulf %81, %81 : vector<8x32xf32>
    %cst_31 = arith.constant dense<0.000000e+00> : vector<8xf32>
    %83 = vector.multi_reduction <add>, %82, %cst_31 [1] : vector<8x32xf32> to vector<8xf32>
    %84 = vector.shape_cast %83 : vector<8xf32> to vector<8x1xf32>
    %cst_32 = arith.constant 3.200000e+01 : f32
    %85 = vector.broadcast %cst_32 : f32 to vector<8x1xf32>
    %86 = arith.divf %84, %85 : vector<8x1xf32>
    %cst_33 = arith.constant 9.99999974E-6 : f32
    %87 = vector.broadcast %cst_33 : f32 to vector<8x1xf32>
    %88 = arith.addf %86, %87 : vector<8x1xf32>
    %89 = math.rsqrt %88 : vector<8x1xf32>
    %90 = vector.broadcast %89 : vector<8x1xf32> to vector<8x32xf32>
    %91 = arith.mulf %81, %90 : vector<8x32xf32>
    %92 = vector.broadcast %4 : vector<1x32xf32> to vector<8x32xf32>
    %93 = arith.mulf %91, %92 : vector<8x32xf32>
    %94 = vector.broadcast %5 : vector<1x32xf32> to vector<8x32xf32>
    %95 = arith.addf %93, %94 : vector<8x32xf32>
    %96 = arith.truncf %95 : vector<8x32xf32> to vector<8x32xbf16>
    %c0_34 = arith.constant 0 : index
    %c0_35 = arith.constant 0 : index
    %97 = vector.load %arg6[%c0_34, %c0_35] : memref<32x64xbf16, #tpu.memory_space<vmem>>, vector<32x64xbf16>
    %cst_36 = arith.constant dense<0.000000e+00> : vector<8x64xf32>
    %98 = tpu.matmul %96, %97, %cst_36 {dimension_numbers = #tpu.dot_dimension_numbers<[1], [0], [0], [1], [0, 0, 1, 1], [], []>} : vector<8x32xbf16>, vector<32x64xbf16>, vector<8x64xf32> -> vector<8x64xf32>
    %c0_37 = arith.constant 0 : index
    %c0_38 = arith.constant 0 : index
    %99 = vector.load %arg7[%c0_37, %c0_38] : memref<1x64xf32, #tpu.memory_space<vmem>>, vector<1x64xf32>
    %100 = vector.broadcast %99 : vector<1x64xf32> to vector<8x64xf32>
    %101 = arith.addf %98, %100 : vector<8x64xf32>
    %cst_39 = arith.constant 0.000000e+00 : f32
    %102 = vector.broadcast %cst_39 : f32 to vector<8x64xf32>
    %103 = arith.maximumf %101, %102 : vector<8x64xf32>
    %104 = arith.truncf %103 : vector<8x64xf32> to vector<8x64xbf16>
    %c0_40 = arith.constant 0 : index
    %c0_41 = arith.constant 0 : index
    %105 = vector.load %arg8[%c0_40, %c0_41] : memref<64x32xbf16, #tpu.memory_space<vmem>>, vector<64x32xbf16>
    %cst_42 = arith.constant dense<0.000000e+00> : vector<8x32xf32>
    %106 = tpu.matmul %104, %105, %cst_42 {dimension_numbers = #tpu.dot_dimension_numbers<[1], [0], [0], [1], [0, 0, 1, 1], [], []>} : vector<8x64xbf16>, vector<64x32xbf16>, vector<8x32xf32> -> vector<8x32xf32>
    %107 = vector.broadcast %7 : vector<1x32xf32> to vector<8x32xf32>
    %108 = arith.addf %106, %107 : vector<8x32xf32>
    %109 = arith.addf %73, %108 : vector<8x32xf32>
    %c0_43 = arith.constant 0 : index
    %c0_44 = arith.constant 0 : index
    %110 = vector.load %arg10[%c0_43, %c0_44] : memref<8x32xf32, #tpu.memory_space<vmem>>, vector<8x32xf32>
    tpu.vector_store %arg10[%c0_43, %c0_44], %109 {strides = array<i32>} : memref<8x32xf32, #tpu.memory_space<vmem>>, vector<8x32xf32>,
    return
  }
  func.func @transform_0(%arg0: i32) -> (i32, i32) {
    %c0_i32 = arith.constant 0 : i32
    %c0_i32_0 = arith.constant 0 : i32
    return %arg0, %c0_i32 : i32, i32
  }
  func.func @transform_1(%arg0: i32) -> (i32, i32) {
    %c0_i32 = arith.constant 0 : i32
    %c0_i32_0 = arith.constant 0 : i32
    return %arg0, %c0_i32 : i32, i32
  }
  func.func @transform_2(%arg0: i32) -> (i32, i32) {
    %c0_i32 = arith.constant 0 : i32
    %c0_i32_0 = arith.constant 0 : i32
    %c0_i32_1 = arith.constant 0 : i32
    return %c0_i32, %c0_i32_0 : i32, i32
  }
  func.func @transform_3(%arg0: i32) -> (i32, i32) {
    %c0_i32 = arith.constant 0 : i32
    %c0_i32_0 = arith.constant 0 : i32
    %c0_i32_1 = arith.constant 0 : i32
    return %c0_i32, %c0_i32_0 : i32, i32
  }
  func.func @transform_4(%arg0: i32) -> (i32, i32) {
    %c0_i32 = arith.constant 0 : i32
    %c0_i32_0 = arith.constant 0 : i32
    %c0_i32_1 = arith.constant 0 : i32
    return %c0_i32, %c0_i32_0 : i32, i32
  }
  func.func @transform_5(%arg0: i32) -> (i32, i32) {
    %c0_i32 = arith.constant 0 : i32
    %c0_i32_0 = arith.constant 0 : i32
    %c0_i32_1 = arith.constant 0 : i32
    return %c0_i32, %c0_i32_0 : i32, i32
  }
  func.func @transform_6(%arg0: i32) -> (i32, i32) {
    %c0_i32 = arith.constant 0 : i32
    %c0_i32_0 = arith.constant 0 : i32
    %c0_i32_1 = arith.constant 0 : i32
    return %c0_i32, %c0_i32_0 : i32, i32
  }
  func.func @transform_7(%arg0: i32) -> (i32, i32) {
    %c0_i32 = arith.constant 0 : i32
    %c0_i32_0 = arith.constant 0 : i32
    %c0_i32_1 = arith.constant 0 : i32
    return %c0_i32, %c0_i32_0 : i32, i32
  }
  func.func @transform_8(%arg0: i32) -> (i32, i32) {
    %c0_i32 = arith.constant 0 : i32
    %c0_i32_0 = arith.constant 0 : i32
    %c0_i32_1 = arith.constant 0 : i32
    return %c0_i32, %c0_i32_0 : i32, i32
  }
  func.func @transform_9(%arg0: i32) -> (i32, i32) {
    %c0_i32 = arith.constant 0 : i32
    %c0_i32_0 = arith.constant 0 : i32
    return %arg0, %c0_i32 : i32, i32
  }
}

module attributes {stable_mosaic.version = 11 : i64} {
  func.func @_encoder_layer_kernel(%arg0: i32, %arg1: memref<8x32xf32, #tpu.memory_space<vmem>>, %arg2: memref<8x1xf32, #tpu.memory_space<vmem>>, %arg3: memref<32x96xbf16, #tpu.memory_space<vmem>>, %arg4: memref<1x96xf32, #tpu.memory_space<vmem>>, %arg5: memref<32x32xbf16, #tpu.memory_space<vmem>>, %arg6: memref<32x64xbf16, #tpu.memory_space<vmem>>, %arg7: memref<1x64xf32, #tpu.memory_space<vmem>>, %arg8: memref<64x32xbf16, #tpu.memory_space<vmem>>, %arg9: memref<6x32xf32, #tpu.memory_space<vmem>>, %arg10: memref<8x32xf32, #tpu.memory_space<vmem>>) attributes {dimension_semantics = [#tpu.dimension_semantics<parallel>], iteration_bounds = array<i64: 2>, scalar_prefetch = 0 : i64, scratch_operands = 0 : i64, tpu.core_type = #tpu.core_type<tc>, window_params = [{transform_indices = @transform_0, window_bounds = array<i64: 8, 32>}, {transform_indices = @transform_1, window_bounds = array<i64: 8, 1>}, {pipeline_mode = #tpu.pipeline_mode<synchronous>, transform_indices = @transform_2, window_bounds = array<i64: 32, 96>}, {pipeline_mode = #tpu.pipeline_mode<synchronous>, transform_indices = @transform_3, window_bounds = array<i64: 1, 96>}, {pipeline_mode = #tpu.pipeline_mode<synchronous>, transform_indices = @transform_4, window_bounds = array<i64: 32, 32>}, {pipeline_mode = #tpu.pipeline_mode<synchronous>, transform_indices = @transform_5, window_bounds = array<i64: 32, 64>}, {pipeline_mode = #tpu.pipeline_mode<synchronous>, transform_indices = @transform_6, window_bounds = array<i64: 1, 64>}, {pipeline_mode = #tpu.pipeline_mode<synchronous>, transform_indices = @transform_7, window_bounds = array<i64: 64, 32>}, {pipeline_mode = #tpu.pipeline_mode<synchronous>, transform_indices = @transform_8, window_bounds = array<i64: 6, 32>}, {transform_indices = @transform_9, window_bounds = array<i64: 8, 32>}]} {
    %c0 = arith.constant 0 : index
    %c0_0 = arith.constant 0 : index
    %0 = vector.load %arg1[%c0, %c0_0] : memref<8x32xf32, #tpu.memory_space<vmem>>, vector<8x32xf32>
    %c0_1 = arith.constant 0 : index
    %c0_2 = arith.constant 0 : index
    %1 = vector.load %arg2[%c0_1, %c0_2] : memref<8x1xf32, #tpu.memory_space<vmem>>, vector<8x1xf32>
    %c0_3 = arith.constant 0 : index
    %c0_4 = arith.constant 0 : index
    %2 = vector.load %arg9[%c0_3, %c0_4] : memref<6x32xf32, #tpu.memory_space<vmem>>, vector<1x32xf32>
    %c1 = arith.constant 1 : index
    %c0_5 = arith.constant 0 : index
    %3 = vector.load %arg9[%c1, %c0_5] : memref<6x32xf32, #tpu.memory_space<vmem>>, vector<1x32xf32>
    %c2 = arith.constant 2 : index
    %c0_6 = arith.constant 0 : index
    %4 = vector.load %arg9[%c2, %c0_6] : memref<6x32xf32, #tpu.memory_space<vmem>>, vector<1x32xf32>
    %c3 = arith.constant 3 : index
    %c0_7 = arith.constant 0 : index
    %5 = vector.load %arg9[%c3, %c0_7] : memref<6x32xf32, #tpu.memory_space<vmem>>, vector<1x32xf32>
    %c4 = arith.constant 4 : index
    %c0_8 = arith.constant 0 : index
    %6 = vector.load %arg9[%c4, %c0_8] : memref<6x32xf32, #tpu.memory_space<vmem>>, vector<1x32xf32>
    %c5 = arith.constant 5 : index
    %c0_9 = arith.constant 0 : index
    %7 = vector.load %arg9[%c5, %c0_9] : memref<6x32xf32, #tpu.memory_space<vmem>>, vector<1x32xf32>
    %8 = vector.broadcast %1 : vector<8x1xf32> to vector<8x32xf32>
    %9 = arith.mulf %0, %8 : vector<8x32xf32>
    %cst = arith.constant dense<0.000000e+00> : vector<8xf32>
    %10 = vector.multi_reduction <add>, %9, %cst [1] : vector<8x32xf32> to vector<8xf32>
    %11 = vector.shape_cast %10 : vector<8xf32> to vector<8x1xf32>
    %cst_10 = arith.constant 3.200000e+01 : f32
    %12 = vector.broadcast %cst_10 : f32 to vector<8x1xf32>
    %13 = arith.divf %11, %12 : vector<8x1xf32>
    %14 = vector.broadcast %13 : vector<8x1xf32> to vector<8x32xf32>
    %15 = arith.subf %9, %14 : vector<8x32xf32>
    %16 = arith.mulf %15, %15 : vector<8x32xf32>
    %cst_11 = arith.constant dense<0.000000e+00> : vector<8xf32>
    %17 = vector.multi_reduction <add>, %16, %cst_11 [1] : vector<8x32xf32> to vector<8xf32>
    %18 = vector.shape_cast %17 : vector<8xf32> to vector<8x1xf32>
    %cst_12 = arith.constant 3.200000e+01 : f32
    %19 = vector.broadcast %cst_12 : f32 to vector<8x1xf32>
    %20 = arith.divf %18, %19 : vector<8x1xf32>
    %cst_13 = arith.constant 9.99999974E-6 : f32
    %21 = vector.broadcast %cst_13 : f32 to vector<8x1xf32>
    %22 = arith.addf %20, %21 : vector<8x1xf32>
    %23 = math.rsqrt %22 : vector<8x1xf32>
    %24 = vector.broadcast %23 : vector<8x1xf32> to vector<8x32xf32>
    %25 = arith.mulf %15, %24 : vector<8x32xf32>
    %26 = vector.broadcast %2 : vector<1x32xf32> to vector<8x32xf32>
    %27 = arith.mulf %25, %26 : vector<8x32xf32>
    %28 = vector.broadcast %3 : vector<1x32xf32> to vector<8x32xf32>
    %29 = arith.addf %27, %28 : vector<8x32xf32>
    %30 = arith.truncf %29 : vector<8x32xf32> to vector<8x32xbf16>
    %c0_14 = arith.constant 0 : index
    %c0_15 = arith.constant 0 : index
    %31 = vector.load %arg3[%c0_14, %c0_15] : memref<32x96xbf16, #tpu.memory_space<vmem>>, vector<32x96xbf16>
    %cst_16 = arith.constant dense<0.000000e+00> : vector<8x96xf32>
    %32 = tpu.matmul %30, %31, %cst_16 {dimension_numbers = #tpu.dot_dimension_numbers<[1], [0], [0], [1], [0, 0, 1, 1], [], []>} : vector<8x32xbf16>, vector<32x96xbf16>, vector<8x96xf32> -> vector<8x96xf32>
    %c0_17 = arith.constant 0 : index
    %c0_18 = arith.constant 0 : index
    %33 = vector.load %arg4[%c0_17, %c0_18] : memref<1x96xf32, #tpu.memory_space<vmem>>, vector<1x96xf32>
    %34 = vector.broadcast %33 : vector<1x96xf32> to vector<8x96xf32>
    %35 = arith.addf %32, %34 : vector<8x96xf32>
    %36 = arith.truncf %35 : vector<8x96xf32> to vector<8x96xbf16>
    %37 = vector.shape_cast %36 : vector<8x96xbf16> to vector<8x12x8xbf16>
    %38 = tpu.transpose %37, [1, 0, 2] : vector<8x12x8xbf16> -> vector<12x8x8xbf16>
    %39 = vector.extract_strided_slice %38 {offsets = [0, 0, 0], sizes = [4, 8, 8], strides = [1, 1, 1]} : vector<12x8x8xbf16> to vector<4x8x8xbf16>
    %40 = vector.extract_strided_slice %38 {offsets = [4, 0, 0], sizes = [4, 8, 8], strides = [1, 1, 1]} : vector<12x8x8xbf16> to vector<4x8x8xbf16>
    %41 = vector.extract_strided_slice %38 {offsets = [8, 0, 0], sizes = [4, 8, 8], strides = [1, 1, 1]} : vector<12x8x8xbf16> to vector<4x8x8xbf16>
    "tpu.trace_start"() <{level = 10 : i32, message = "gqd,gkd->gqk"}> : () -> ()
    %cst_19 = arith.constant dense<0.000000e+00> : vector<4x8x8xf32>
    %42 = tpu.matmul %39, %40, %cst_19 {dimension_numbers = #tpu.dot_dimension_numbers<[2], [2], [1], [1], [0, 0, 0, 1, 1, 1], [0], [0]>} : vector<4x8x8xbf16>, vector<4x8x8xbf16>, vector<4x8x8xf32> -> vector<4x8x8xf32>
    "tpu.trace_stop"() : () -> ()
    %cst_20 = arith.constant 0.353553385 : f32
    %43 = vector.broadcast %cst_20 : f32 to vector<4x8x8xf32>
    %44 = arith.mulf %42, %43 : vector<4x8x8xf32>
    %cst_21 = arith.constant 1.000000e+00 : f32
    %45 = vector.broadcast %cst_21 : f32 to vector<8x1xf32>
    %46 = arith.subf %1, %45 : vector<8x1xf32>
    %cst_22 = arith.constant 1.000000e+09 : f32
    %47 = vector.broadcast %cst_22 : f32 to vector<8x1xf32>
    %48 = arith.mulf %46, %47 : vector<8x1xf32>
    %49 = vector.shape_cast %48 : vector<8x1xf32> to vector<1x8x1xf32>
    %50 = vector.shape_cast %49 : vector<1x8x1xf32> to vector<1x8x1xf32>
    %51 = vector.broadcast %50 : vector<1x8x1xf32> to vector<4x8x1xf32>
    %52 = vector.broadcast %51 : vector<4x8x1xf32> to vector<4x8x8xf32>
    %53 = arith.addf %44, %52 : vector<4x8x8xf32>
    %cst_23 = arith.constant dense<0xFF800000> : vector<4x8xf32>
    %54 = vector.multi_reduction <maximumf>, %53, %cst_23 [2] : vector<4x8x8xf32> to vector<4x8xf32>
    %55 = vector.shape_cast %54 : vector<4x8xf32> to vector<4x8x1xf32>
    %56 = vector.broadcast %55 : vector<4x8x1xf32> to vector<4x8x8xf32>
    %57 = arith.subf %53, %56 : vector<4x8x8xf32>
    %58 = math.exp %57 : vector<4x8x8xf32>
    %cst_24 = arith.constant dense<0.000000e+00> : vector<4x8xf32>
    %59 = vector.multi_reduction <add>, %58, %cst_24 [2] : vector<4x8x8xf32> to vector<4x8xf32>
    %60 = vector.shape_cast %59 : vector<4x8xf32> to vector<4x8x1xf32>
    %61 = tpu.reciprocal %60 {approx = true} : vector<4x8x1xf32> -> vector<4x8x1xf32>
    %62 = vector.broadcast %61 : vector<4x8x1xf32> to vector<4x8x8xf32>
    %63 = arith.mulf %58, %62 : vector<4x8x8xf32>
    %64 = arith.truncf %63 : vector<4x8x8xf32> to vector<4x8x8xbf16>
    "tpu.trace_start"() <{level = 10 : i32, message = "gqk,gkd->gqd"}> : () -> ()
    %cst_25 = arith.constant dense<0.000000e+00> : vector<4x8x8xf32>
    %65 = tpu.matmul %64, %41, %cst_25 {dimension_numbers = #tpu.dot_dimension_numbers<[2], [1], [1], [2], [0, 0, 0, 1, 1, 2], [0], [0]>} : vector<4x8x8xbf16>, vector<4x8x8xbf16>, vector<4x8x8xf32> -> vector<4x8x8xf32>
    "tpu.trace_stop"() : () -> ()
    %66 = arith.truncf %65 : vector<4x8x8xf32> to vector<4x8x8xbf16>
    %67 = tpu.transpose %66, [1, 0, 2] : vector<4x8x8xbf16> -> vector<8x4x8xbf16>
    %68 = vector.shape_cast %67 : vector<8x4x8xbf16> to vector<8x32xbf16>
    %c0_26 = arith.constant 0 : index
    %c0_27 = arith.constant 0 : index
    %69 = vector.load %arg5[%c0_26, %c0_27] : memref<32x32xbf16, #tpu.memory_space<vmem>>, vector<32x32xbf16>
    %cst_28 = arith.constant dense<0.000000e+00> : vector<8x32xf32>
    %70 = tpu.matmul %68, %69, %cst_28 {dimension_numbers = #tpu.dot_dimension_numbers<[1], [0], [0], [1], [0, 0, 1, 1], [], []>} : vector<8x32xbf16>, vector<32x32xbf16>, vector<8x32xf32> -> vector<8x32xf32>
    %71 = vector.broadcast %6 : vector<1x32xf32> to vector<8x32xf32>
    %72 = arith.addf %70, %71 : vector<8x32xf32>
    %73 = arith.addf %0, %72 : vector<8x32xf32>
    %74 = vector.broadcast %1 : vector<8x1xf32> to vector<8x32xf32>
    %75 = arith.mulf %73, %74 : vector<8x32xf32>
    %cst_29 = arith.constant dense<0.000000e+00> : vector<8xf32>
    %76 = vector.multi_reduction <add>, %75, %cst_29 [1] : vector<8x32xf32> to vector<8xf32>
    %77 = vector.shape_cast %76 : vector<8xf32> to vector<8x1xf32>
    %cst_30 = arith.constant 3.200000e+01 : f32
    %78 = vector.broadcast %cst_30 : f32 to vector<8x1xf32>
    %79 = arith.divf %77, %78 : vector<8x1xf32>
    %80 = vector.broadcast %79 : vector<8x1xf32> to vector<8x32xf32>
    %81 = arith.subf %75, %80 : vector<8x32xf32>
    %82 = arith.mulf %81, %81 : vector<8x32xf32>
    %cst_31 = arith.constant dense<0.000000e+00> : vector<8xf32>
    %83 = vector.multi_reduction <add>, %82, %cst_31 [1] : vector<8x32xf32> to vector<8xf32>
    %84 = vector.shape_cast %83 : vector<8xf32> to vector<8x1xf32>
    %cst_32 = arith.constant 3.200000e+01 : f32
    %85 = vector.broadcast %cst_32 : f32 to vector<8x1xf32>
    %86 = arith.divf %84, %85 : vector<8x1xf32>
    %cst_33 = arith.constant 9.99999974E-6 : f32
    %87 = vector.broadcast %cst_33 : f32 to vector<8x1xf32>
    %88 = arith.addf %86, %87 : vector<8x1xf32>
    %89 = math.rsqrt %88 : vector<8x1xf32>
    %90 = vector.broadcast %89 : vector<8x1xf32> to vector<8x32xf32>
    %91 = arith.mulf %81, %90 : vector<8x32xf32>
    %92 = vector.broadcast %4 : vector<1x32xf32> to vector<8x32xf32>
    %93 = arith.mulf %91, %92 : vector<8x32xf32>
    %94 = vector.broadcast %5 : vector<1x32xf32> to vector<8x32xf32>
    %95 = arith.addf %93, %94 : vector<8x32xf32>
    %96 = arith.truncf %95 : vector<8x32xf32> to vector<8x32xbf16>
    %c0_34 = arith.constant 0 : index
    %c0_35 = arith.constant 0 : index
    %97 = vector.load %arg6[%c0_34, %c0_35] : memref<32x64xbf16, #tpu.memory_space<vmem>>, vector<32x64xbf16>
    %cst_36 = arith.constant dense<0.000000e+00> : vector<8x64xf32>
    %98 = tpu.matmul %96, %97, %cst_36 {dimension_numbers = #tpu.dot_dimension_numbers<[1], [0], [0], [1], [0, 0, 1, 1], [], []>} : vector<8x32xbf16>, vector<32x64xbf16>, vector<8x64xf32> -> vector<8x64xf32>
    %c0_37 = arith.constant 0 : index
    %c0_38 = arith.constant 0 : index
    %99 = vector.load %arg7[%c0_37, %c0_38] : memref<1x64xf32, #tpu.memory_space<vmem>>, vector<1x64xf32>
    %100 = vector.broadcast %99 : vector<1x64xf32> to vector<8x64xf32>
    %101 = arith.addf %98, %100 : vector<8x64xf32>
    %cst_39 = arith.constant 0.000000e+00 : f32
    %102 = vector.broadcast %cst_39 : f32 to vector<8x64xf32>
    %103 = arith.maximumf %101, %102 : vector<8x64xf32>
    %104 = arith.truncf %103 : vector<8x64xf32> to vector<8x64xbf16>
    %c0_40 = arith.constant 0 : index
    %c0_41 = arith.constant 0 : index
    %105 = vector.load %arg8[%c0_40, %c0_41] : memref<64x32xbf16, #tpu.memory_space<vmem>>, vector<64x32xbf16>
    %cst_42 = arith.constant dense<0.000000e+00> : vector<8x32xf32>
    %106 = tpu.matmul %104, %105, %cst_42 {dimension_numbers = #tpu.dot_dimension_numbers<[1], [0], [0], [1], [0, 0, 1, 1], [], []>} : vector<8x64xbf16>, vector<64x32xbf16>, vector<8x32xf32> -> vector<8x32xf32>
    %107 = vector.broadcast %7 : vector<1x32xf32> to vector<8x32xf32>
    %108 = arith.addf %106, %107 : vector<8x32xf32>
    %109 = arith.addf %73, %108 : vector<8x32xf32>
    %c0_43 = arith.constant 0 : index
    %c0_44 = arith.constant 0 : index
    %110 = vector.load %arg10[%c0_43, %c0_44] : memref<8x32xf32, #tpu.memory_space<vmem>>, vector<8x32xf32>
    tpu.vector_store %arg10[%c0_43, %c0_44], %109 {strides = array<i32>} : memref<8x32xf32, #tpu.memory_space<vmem>>, vector<8x32xf32>,
    return
  }
  func.func @transform_0(%arg0: i32) -> (i32, i32) {
    %c0_i32 = arith.constant 0 : i32
    %c0_i32_0 = arith.constant 0 : i32
    return %arg0, %c0_i32 : i32, i32
  }
  func.func @transform_1(%arg0: i32) -> (i32, i32) {
    %c0_i32 = arith.constant 0 : i32
    %c0_i32_0 = arith.constant 0 : i32
    return %arg0, %c0_i32 : i32, i32
  }
  func.func @transform_2(%arg0: i32) -> (i32, i32) {
    %c0_i32 = arith.constant 0 : i32
    %c0_i32_0 = arith.constant 0 : i32
    %c0_i32_1 = arith.constant 0 : i32
    return %c0_i32, %c0_i32_0 : i32, i32
  }
  func.func @transform_3(%arg0: i32) -> (i32, i32) {
    %c0_i32 = arith.constant 0 : i32
    %c0_i32_0 = arith.constant 0 : i32
    %c0_i32_1 = arith.constant 0 : i32
    return %c0_i32, %c0_i32_0 : i32, i32
  }
  func.func @transform_4(%arg0: i32) -> (i32, i32) {
    %c0_i32 = arith.constant 0 : i32
    %c0_i32_0 = arith.constant 0 : i32
    %c0_i32_1 = arith.constant 0 : i32
    return %c0_i32, %c0_i32_0 : i32, i32
  }
  func.func @transform_5(%arg0: i32) -> (i32, i32) {
    %c0_i32 = arith.constant 0 : i32
    %c0_i32_0 = arith.constant 0 : i32
    %c0_i32_1 = arith.constant 0 : i32
    return %c0_i32, %c0_i32_0 : i32, i32
  }
  func.func @transform_6(%arg0: i32) -> (i32, i32) {
    %c0_i32 = arith.constant 0 : i32
    %c0_i32_0 = arith.constant 0 : i32
    %c0_i32_1 = arith.constant 0 : i32
    return %c0_i32, %c0_i32_0 : i32, i32
  }
  func.func @transform_7(%arg0: i32) -> (i32, i32) {
    %c0_i32 = arith.constant 0 : i32
    %c0_i32_0 = arith.constant 0 : i32
    %c0_i32_1 = arith.constant 0 : i32
    return %c0_i32, %c0_i32_0 : i32, i32
  }
  func.func @transform_8(%arg0: i32) -> (i32, i32) {
    %c0_i32 = arith.constant 0 : i32
    %c0_i32_0 = arith.constant 0 : i32
    %c0_i32_1 = arith.constant 0 : i32
    return %c0_i32, %c0_i32_0 : i32, i32
  }
  func.func @transform_9(%arg0: i32) -> (i32, i32) {
    %c0_i32 = arith.constant 0 : i32
    %c0_i32_0 = arith.constant 0 : i32
    return %arg0, %c0_i32 : i32, i32
  }
}

</mosaic_0001>

<bundles_post_ra>
// kernel: tpu_custom_call.1
= control target key start
LH: loop header
LB: loop body
LE: loop exit
PB: predicated region body
PF: predicated region fallthrough
CT: control target
= control target key end

     0   :  { %14 = vsyncpa [#allocation3], 0  ;;  %s2527_s0 = inlined_call_operand.vmem [shape: f32[16,32], index: 0, kind: input, shape index: {}]   ;;  %s2528_s1 = inlined_call_operand.vmem [shape: f32[16,1], index: 1, kind: input, shape index: {}]   ;;  %s2529_s2 = inlined_call_operand.vmem [shape: bf16[32,96], index: 2, kind: input, shape index: {}]   ;;  %s2530_s3 = inlined_call_operand.hbm [shape: f32[1,96], index: 3, kind: input, shape index: {}]   ;;  %s2531_s4 = inlined_call_operand.vmem [shape: bf16[32,32], index: 4, kind: input, shape index: {}]   ;;  %s2532_s5 = inlined_call_operand.vmem [shape: bf16[32,64], index: 5, kind: input, shape index: {}]   ;;  %s2533_s6 = inlined_call_operand.vmem [shape: f32[1,64], index: 6, kind: input, shape index: {}]   ;;  %s2534_s7 = inlined_call_operand.vmem [shape: bf16[64,32], index: 7, kind: input, shape index: {}]   ;;  %s2535_s8 = inlined_call_operand.vmem [shape: f32[6,32], index: 8, kind: input, shape index: {}]   ;;  %s2536_s9 = inlined_call_operand.hbm [shape: f32[16,32], index: 9, kind: output, shape index: {}]  }
   0x1   :  { %15 = vsyncpa [#allocation4], 0 }
   0x2   :  { %17 = vsyncpa [#allocation4 + $0x1], 0  ;;  %s2188_s30 = smov 0   ;;  %s2190_s10 = smov 0  }
   0x3   :  { %s2192_s11 = smov 0   ;;  %s2194_s12 = smov 0  }
   0x4 LB: > { %s2209_s13 = sadd.s32 4294967295, %s2115_s12   ;;  %s1763_s14 = sadd.s32 4294967294, %s2115_s12   ;;  %s2115_s12 = sphi %s2194_s12, %s2552_s12   ;;  %s2111_s11 = sphi %s2192_s11, %s2551_s11   ;;  %s2107_s10 = sphi %s2190_s10, %s2550_s10   ;;  %s2103_s30 = sphi %s2188_s30, %s2549_s30  }
   0x5   : > { %s2213_s15 = sadd.s32 1, %s2115_s12   ;;  %s229_s16 = sadd.s32 1, %s2111_s11 }
   0x6   : > { %s226_s17 = ssub.s32 %s2115_s12, %s2213_s15  ;;  %p239_p0 = scmp.ne.s32.totalorder %s2111_s11, %s2107_s10 }
   0x7   : > { %p227_p1 = scmp.eq.s32.totalorder %s226_s17, 0  ;;  %p240_p2 = scmp.eq.s32.totalorder %s2209_s13, 1 }
   0x8   : > { %p245_p3 = scmp.ne.s32.totalorder %s2107_s10, %s2103_s30  ;;  %p246_p4 = scmp.eq.s32.totalorder %s1763_s14, 1 }
   0x9   : > { %s2224_s18 = scalar_select %p227_p1, %s2111_s11, %s229_s16  }
   0xa   : > { %p2226_p5 = por %p240_p2, %p239_p0  ;;  %p2230_p6 = por %p246_p4, %p245_p3 }
   0xb   : > { %p1764_p7 = scmp.ge.s32.totalorder %s2115_s12, 1  ;;  %p253_p8 = scmp.lt.s32.totalorder %s2115_s12, 3 }
   0xc   : > { %s2540_s19 = scalar_select %p2226_p5, 1, 0 }
   0xd   : > { %s2541_s20 = scalar_select %p2230_p6, 1, 0 }
   0xe   : > { %p2537_p9 = scmp.eq.s32.totalorder %s2209_s13, 0  ;;  %p2237_p10 = pnand %p1764_p7, %p253_p8 }
   0xf   : > { %s2117_s22 = smov [#allocation2]   ;;  %s2021_s27 = scalar_lea.hbm %s2530_s3, 16 }
  0x10   : > { %s2542_s21 = scalar_select %p2237_p10, 1, 0 }
  0x11   : > { %s269_s23 = sshll.u32 %s2117_s22, 4  ;;  %p1927_p11 = pneg %p2237_p10  ;;  %s270_s23 = int_to_ptr.vmem [resolvable:$true] %s269_s23 }
  0x12   : > { %p2022_p13 = scmp.ne.s32.totalorder %s2530_s3, %s2021_s27  ;;  %p2028_p3 = scmp.lt.u32.totalorder %s2021_s27, %s2530_s3 }
  0x13   : > { %p2245_p12 = pnand %p2537_p9, %p1927_p11 }
  0x15   : > { %p2023_p0 = pneg %p2245_p12 }
  0x17   : > { %p2024_p1 = pnand %p2023_p0, %p2022_p13 }
  0x19   : > { %p2025_p2 = pneg %p2024_p1 }
  0x1b   : > { %p2030_p4 = pnand %p2028_p3, %p2025_p2 }
  0x1d   : > { %2033 = shalt.err (!%p2030_p4)
}
  0x1e   : > { %s2034_s17 = scalar_lea.vmem %s270_s23, 16  ;;  %s2041_s22 = scalar_lea.vmem %s270_s23, 32 }
  0x1f   : > { %p2035_p7 = scmp.ne.s32.totalorder %s270_s23, %s2034_s17  ;;  %p2042_p9 = scmp.lt.s32.totalorder %s270_s23, %s270_s23 }
  0x20   : > { %p2043_p6 = scmp.lt.s32.totalorder %s2041_s22, %s2034_s17 }
  0x21   : > { %p2037_p8 = pnand %p2035_p7, %p2023_p0 }
  0x22   : > { %p2044_p5 = por %p2043_p6, %p2042_p9 }
  0x23   : > { %p2038_p11 = pneg %p2037_p8 }
  0x25   : > { %p2045_p10 = pnand %p2044_p5, %p2038_p11 }
  0x27   : > { %2048 = shalt.err (!%p2045_p10)
}
  0x28   : > { %1930 = dma.hbm_to_vmem [thread:$0]  (!%p2245_p12), %s2530_s3, 16, %s270_s23, [#allocation3]  }
  0x29   : > { %p2544_p13 = scmp.ne.s32.totalorder %s2542_s21, 0 }
  0x2a   : > { %p2545_p1 = scmp.eq.s32.totalorder (!%p2544_p13), %s2209_s13, 0 }
  0x2b   : > { %311 = sbr.rel (%p2544_p13) target bundleno = 2783 (0xadf), region = 56 }
  0x32   : > { %2094 = dma.done.wait (%p2545_p1), [#allocation3], 16   ;;  %p2546_p0 = pmov %p2545_p1 }
  0x33   : > { %p350_p6 = scmp.lt.s32.totalorder %s2209_s13, 1  ;;  %v2118_v0 = vmov 0   ;;  %vm373_vm0 = vcmask 261120   ;;  %v1991_v11 = vld [vmem:[%s2529_s2] sm:$0xff]   ;;  %v2119_v12 = vmov 0.0   ;;  %vm2120_vm1 = vmmov 0  }
  0x34   : > { %2096 = vsyncadd (%p2546_p0), [#allocation3], 4294967280  ;;  %1990 = vset.pattern.permute.xlu0 %v2118_v0  ;;  %1837 = vmatprep.subr.bf16.mxu0 %v2119_v12  ;;  %v1992_v13 = vld [vmem:[%s2529_s2 + $0x8] sm:$0xff]   ;;  %v1772_v18 = vld [vmem:[%s2535_s8] ss:$0 sm:$0xff]  ;;  %s2122_s21 = smov 120   ;;  %v500_v41 = vlaneseq }
  0x35   : > { %s351_s24 = scalar_select %p350_p6, %s2209_s13, 1  ;;  %1841 = vmatprep.mubr.msk.bf16.mxu0 %vm2120_vm1, %v2119_v12  ;;  %1838 = vmatpush3.bf16.msra.mxu0 %v1991_v11  ;;  %v1773_v20 = vld [vmem:[%s2535_s8 + $0x1] ss:$0 sm:$0xff]  ;;  %v1774_v24 = vld [vmem:[#allocation2] ss:$0 sm:$0xff]  ;;  %vm818_vm2 = vcmask 64512  }
  0x36   : > { %1845 = vmatprep.subr.bf16.mxu1 %v2119_v12  ;;  %1839 = vmatprep.subr.bf16.mxu0 %v2119_v12  ;;  %s2123_s14 = smov 112   ;;  %s2125_s17 = smov 96   ;;  %v2132_v39 = vmov 1983009808   ;;  %v501_v44 = vshrl.u32 %v500_v41, 7  ;;  %vm1069_vm3 = vcmask 1043456  }
  0x37   : > { %s1770_s27 = sshll.u32 %s351_s24, 3  ;;  %1847 = vmatprep.mubr.msk.bf16.mxu1 %vm2120_vm1, %v2119_v12  ;;  %s2126_s22 = smov 88   ;;  %v498_v40 = vunpack.c.l.s4 %v2132_v39  ;;  %v2133_v45 = vmov 1934713408   ;;  %vm1422_vm4 = vcmask 130048   ;;  %vm1425_vm5 = vcmask 195584  }
  0x38   : > { %s357_s23 = scalar_lea.vmem %s2528_s1, %s1770_s27  ;;  %s353_s16 = scalar_lea.vmem %s2527_s0, %s1770_s27  ;;  %v531_v46 = vunpack.c.l.s4 %v2133_v45  ;;  %vm1620_vm6 = vcmask 523264  }
  0x39   : > { %v360_v1 = vld [vmem:[%s357_s23] sm:$0xff]  ;;  %1840 = vmatpush3.bf16.msra.mxu0 %v1992_v13  ;;  %s2121_s23 = smov 80   ;;  %s2127_s25 = smov 72   ;;  %v499_v43 = vunpack.c.0.s8 %v498_v40 }
  0x3a   : > { %369 = vperm.xlu0 %1990, %v360_v1   ;;  %v2280_v2 = vld [vmem:[%s353_s16] sm:$0xff]  ;;  %1851 = vmatprep.subr.bf16.mxu0 %v2119_v12  ;;  %v1782_v26 = vadd.f32 -1.0, %v360_v1  ;;  %s2124_s16 = smov 104   ;;  %s2128_s26 = smov 64   ;;  %v532_v52 = vunpack.c.0.s8 %v531_v46 }
  0x3b   : > { %s2129_s24 = smov 56   ;;  %s2130_s27 = smov 48   ;;  %v2311_v50 = vsub.s32 %v499_v43, %v501_v44 }
  0x3c   : > { %v1008_v32 = vmul.f32 1e+09, %v1782_v26  ;;  %s2131_s28 = smov 40   ;;  %v2317_v60 = vsub.s32 %v532_v52, %v501_v44  ;;  %p2547_p9 = scmp.ne.s32.totalorder %s2540_s19, 0 }
  0xb9   : > { %v2282_v3 = vpop.permute.xlu0 %369 }
  0xba   : > { %v372_v4 = vmul.f32 %v2282_v3, %v2280_v2 }
  0xbc   : > { %v374_v5 = vsel %vm373_vm0, %v372_v4, 0.0 }
  0xbd   : > { %375 = vadd.xlane.f32.xlu0 %v374_v5 }
 0x14a   : > { %v376_v6 = vpop.xlane.xlu0 %375 }
 0x14b   : > { %v378_v7 = vmul.f32 0.03125, %v376_v6 }
 0x14d   : > { %v379_v8 = vsub.f32 %v372_v4, %v378_v7 }
 0x14f   : > { %v380_v9 = vmul.f32 %v379_v8, %v379_v8 }
 0x151   : > { %v381_v10 = vsel %vm373_vm0, %v380_v9, 0.0 }
 0x152   : > { %382 = vadd.xlane.f32.xlu1 %v381_v10 }
 0x1df   : > { %v383_v14 = vpop.xlane.xlu1 %382 }
 0x1e0   : > { %v384_v15 = vmul.f32 0.03125, %v383_v14 }
 0x1e2   : > { %v385_v16 = vadd.f32 1e-05, %v384_v15 }
 0x1e4   : > { %2001 = vrsqrt.f32 %v385_v16 }
 0x1ee   : > { %v2002_v17 = vpop.eup %2001 }
 0x1ef   : > { %v387_v19 = vmul.f32 %v2002_v17, %v379_v8 }
 0x1f1   : > { %v392_v21 = vmul.f32 %v1772_v18, %v387_v19 }
 0x1f3   : > { %v397_v22 = vadd.f32 %v1773_v20, %v392_v21 }
 0x1f5   : > { %v398_v23 = vpack.c.bf16 %v397_v22, %v397_v22 }
 0x1f7   : > { %1842 = vmatmul.mubr.msk.bf16.vlgmr.msra.gmra.mrb[0].mxu0 %vm373_vm0, %v398_v23 }
 0x1f8   : > { %1853 = vmatprep.mubr.msk.bf16.mxu0 %vm2120_vm1, %v2119_v12 }
 0x2ca   : > { %v459_v25 = vpop.f32.mrb[0].mxu0 }
 0x2cb   : > { %v460_v27 = vadd.f32 %v1774_v24, %v459_v25  ;;  %v1843_v28 = vpop.f32.mrb[1].mxu0 }
 0x2cc   : > { %v462_v29 = vpop.f32.mrb[2].mxu0 }
 0x2cd   : > { %v465_v30 = vpack.c.bf16 %v460_v27, %v460_v27  ;;  %v1844_v31 = vpop.f32.mrb[3].mxu0 }
 0x2cf   : > { %482 = vrot.lane.b32.xlu0 %v465_v30, %s2121_s23  ;;  %467 = vrot.lane.b32.xlu1 %v465_v30, %s2122_s21  ;;  %s2137_s21 = smov [#allocation5]  }
 0x2d3   : > { %1011 = vperm.xlu0 %1990, %v1008_v32   ;;  %470 = vrot.lane.b32.xlu1 %v465_v30, %s2123_s14  ;;  %s347_s14 = sand.u32 1, %s2107_s10  }
 0x2d7   : > { %473 = vrot.lane.b32.xlu1 %v465_v30, %s2124_s16  ;;  %s2134_s16 = smov 8  }
 0x2db   : > { %476 = vrot.lane.b32.xlu1 %v465_v30, %s2125_s17  ;;  %s2135_s17 = smov 16  }
 0x2df   : > { %479 = vrot.lane.b32.xlu1 %v465_v30, %s2126_s22  ;;  %s2136_s22 = smov 24  }
 0x2e3   : > { %485 = vrot.lane.b32.xlu1 %v465_v30, %s2127_s25  ;;  %s1804_s25 = sshll.u32 %s2209_s13, 7  ;;  %s1667_s13 = scalar_lea.sflag [#allocation4], %s347_s14 }
 0x2e4   : > { %s2484_s29 = scalar_lea.hbm %s2536_s9, %s1804_s25 }
 0x2e7   : > { %488 = vrot.lane.b32.xlu1 %v465_v30, %s2128_s26 }
 0x2eb   : > { %490 = vrot.lane.b32.xlu1 %v465_v30, %s2129_s24 }
 0x2ef   : > { %492 = vrot.lane.b32.xlu1 %v465_v30, %s2130_s27 }
 0x2f3   : > { %494 = vrot.lane.b32.xlu1 %v465_v30, %s2131_s28 }
 0x341   : > { %v468_v33 = vpop.permute.xlu1 %467  ;;  %v483_v48 = vpop.permute.xlu0 %482 }
 0x345   : > { %v471_v34 = vpop.permute.xlu1 %470 }
 0x346   : > { %v504_v51 = vcombine.low %v471_v34, %v483_v48 }
 0x348   : > { %v511_v57 = vrot.slane %v504_v51, %v2311_v50 }
 0x349   : > { %v474_v35 = vpop.permute.xlu1 %473 }
 0x34d   : > { %v477_v36 = vpop.permute.xlu1 %476 }
 0x34e   : > { %v496_v47 = vcombine.low %v465_v30, %v477_v36 }
 0x350   : > { %v503_v54 = vrot.slane %v496_v47, %v2311_v50 }
 0x351   : > { %v480_v37 = vpop.permute.xlu1 %479 }
 0x352   : > { %v564_v55 = vcombine.low %v468_v33, %v480_v37  ;;  %v528_v62 = vcombine.low %v503_v54, %v511_v57  ;;  %v529_v63 = vcombine.high %v503_v54, %v511_v57 }
 0x354   : > { %v571_v5 = vrot.slane %v564_v55, %v2311_v50  ;;  %v536_v14 = vrot.slane %v528_v62, %v2317_v60  ;;  %v543_v15 = vrot.slane %v529_v63, %v2317_v60 }
 0x355   : > { %v486_v38 = vpop.permute.xlu1 %485 }
 0x356   : > { %v572_v53 = vcombine.low %v474_v35, %v486_v38 }
 0x358   : > { %v579_v61 = vrot.slane %v572_v53, %v2311_v50 }
 0x359   : > { %v489_v42 = vpop.permute.xlu1 %488 }
 0x35a   : > { %v519_v58 = vrot.slane %v489_v42, %v2311_v50  ;;  %v596_v10 = vcombine.low %v571_v5, %v579_v61  ;;  %v597_v11 = vcombine.high %v571_v5, %v579_v61 }
 0x35c   : > { %v604_v22 = vrot.slane %v596_v10, %v2317_v60  ;;  %v611_v23 = vrot.slane %v597_v11, %v2317_v60 }
 0x35d   : > { %v491_v49 = vpop.permute.xlu1 %490 }
 0x35e   : > { %v587_v13 = vrot.slane %v491_v49, %v2311_v50 }
 0x361   : > { %v493_v56 = vpop.permute.xlu1 %492 }
 0x362   : > { %v527_v59 = vrot.slane %v493_v56, %v2311_v50 }
 0x364   : > { %v544_v1 = vcombine.low %v519_v58, %v527_v59  ;;  %v545_v4 = vcombine.high %v519_v58, %v527_v59 }
 0x365   : > { %v495_v6 = vpop.permute.xlu1 %494 }
 0x366   : > { %v552_v7 = vrot.slane %v544_v1, %v2317_v60  ;;  %v559_v8 = vrot.slane %v545_v4, %v2317_v60  ;;  %v595_v9 = vrot.slane %v495_v6, %v2311_v50 }
 0x368   : > { %v612_v16 = vcombine.low %v587_v13, %v595_v9  ;;  %v613_v17 = vcombine.high %v587_v13, %v595_v9  ;;  %v560_v18 = vcombine.low %v536_v14, %v552_v7  ;;  %v561_v19 = vcombine.high %v536_v14, %v552_v7 }
 0x369   : > { %v562_v20 = vcombine.low %v543_v15, %v559_v8  ;;  %v563_v21 = vcombine.high %v543_v15, %v559_v8 }
 0x36a   : > { %v620_v24 = vrot.slane %v612_v16, %v2317_v60  ;;  %v627_v25 = vrot.slane %v613_v17, %v2317_v60  ;;  %v636_v30 = vshrl.u32 %v560_v18, 16  ;;  %v644_v31 = vshrl.u32 %v561_v19, 16 }
 0x36b   : > { %v652_v32 = vshrl.u32 %v562_v20, 16  ;;  %v660_v33 = vshrl.u32 %v563_v21, 16 }
 0x36c   : > { %v628_v26 = vcombine.low %v604_v22, %v620_v24  ;;  %v629_v27 = vcombine.high %v604_v22, %v620_v24  ;;  %v630_v28 = vcombine.low %v611_v23, %v627_v25  ;;  %v631_v29 = vcombine.high %v611_v23, %v627_v25 }
 0x36e   : > { %v634_v34 = vpack.i.b16 %v628_v26, %v560_v18  ;;  %v637_v35 = vshrl.u32 %v628_v26, 16  ;;  %v642_v36 = vpack.i.b16 %v629_v27, %v561_v19  ;;  %v645_v37 = vshrl.u32 %v629_v27, 16 }
 0x36f   : > { %v650_v38 = vpack.i.b16 %v630_v28, %v562_v20  ;;  %v653_v39 = vshrl.u32 %v630_v28, 16  ;;  %v658_v40 = vpack.i.b16 %v631_v29, %v563_v21  ;;  %v661_v41 = vshrl.u32 %v631_v29, 16 }
 0x370   : > { %v638_v42 = vpack.i.b16 %v637_v35, %v636_v30  ;;  %v646_v43 = vpack.i.b16 %v645_v37, %v644_v31 }
 0x371   : > { %v654_v44 = vpack.i.b16 %v653_v39, %v652_v32  ;;  %v662_v45 = vpack.i.b16 %v661_v41, %v660_v33  ;;  %v664_v46 = vcombine.low %v634_v34, %v650_v38  ;;  %v665_v47 = vcombine.high %v634_v34, %v650_v38 }
 0x372   : > { %v680_v48 = vcombine.low %v642_v36, %v658_v40  ;;  %v681_v49 = vcombine.high %v642_v36, %v658_v40 }
 0x373   : > { %v679_v51 = vrot.slane %v665_v47, %v2311_v50  ;;  %v723_v52 = vcombine.low %v638_v42, %v654_v44  ;;  %v724_v53 = vcombine.high %v638_v42, %v654_v44  ;;  %v739_v54 = vcombine.low %v646_v43, %v662_v45 }
 0x374   : > { %v695_v55 = vrot.slane %v681_v49, %v2311_v50  ;;  %v740_v56 = vcombine.high %v646_v43, %v662_v45  ;;  %v672_v57 = vrot.slane %v664_v46, %v2311_v50  ;;  %v688_v58 = vrot.slane %v680_v48, %v2311_v50 }
 0x375   : > { %v731_v59 = vrot.slane %v723_v52, %v2311_v50  ;;  %v747_v61 = vrot.slane %v739_v54, %v2311_v50  ;;  %v738_v62 = vrot.slane %v724_v53, %v2311_v50 }
 0x376   : > { %v697_v63 = vcombine.high %v672_v57, %v688_v58  ;;  %v754_v1 = vrot.slane %v740_v56, %v2311_v50  ;;  %v712_v7 = vcombine.low %v679_v51, %v695_v55  ;;  %v696_v10 = vcombine.low %v672_v57, %v688_v58  ;;  %v1012_v56 = vpop.permute.xlu0 %1011 }
 0x377   : > { %v756_v4 = vcombine.high %v731_v59, %v747_v61  ;;  %v755_v6 = vcombine.low %v731_v59, %v747_v61 }
 0x378   : > { %v711_v5 = vrot.slane %v697_v63, %v2317_v60  ;;  %v771_v9 = vcombine.low %v738_v62, %v754_v1  ;;  %v719_v17 = vrot.slane %v712_v7, %v2317_v60  ;;  %v704_v22 = vrot.slane %v696_v10, %v2317_v60 }
 0x379   : > { %v770_v8 = vrot.slane %v756_v4, %v2317_v60  ;;  %v763_v16 = vrot.slane %v755_v6, %v2317_v60 }
 0x37a   : > { %v797_v13 = vshrl.u32 %v711_v5, 16  ;;  %v721_v20 = vcombine.high %v711_v5, %v2118_v0  ;;  %v778_v21 = vrot.slane %v771_v9, %v2317_v60  ;;  %v722_v25 = vcombine.high %v719_v17, %v2118_v0 }
 0x37b   : > { %v796_v11 = vpack.i.b16 %v770_v8, %v711_v5  ;;  %v798_v14 = vshrl.u32 %v770_v8, 16  ;;  %v780_v15 = vcombine.high %v770_v8, %v2118_v0  ;;  %v786_v27 = vshrl.u32 %v763_v16, 16 }
 0x37c   : > { %v803_v28 = vshrl.u32 %v721_v20, 16  ;;  %v781_v29 = vcombine.high %v778_v21, %v2118_v0  ;;  %v784_v30 = vpack.i.b16 %v763_v16, %v704_v22  ;;  %v785_v31 = vshrl.u32 %v704_v22, 16 }
 0x37d   : > { %v823_v18 = vsel %vm818_vm2, %v796_v11, 0  ;;  %v799_v19 = vpack.i.b16 %v798_v14, %v797_v13  ;;  %v804_v24 = vshrl.u32 %v780_v15, 16  ;;  %v802_v26 = vpack.i.b16 %v780_v15, %v721_v20 }
 0x37e   : > { %1846 = vmatpush3.bf16.xpose.msra.mxu1 %v823_v18  ;;  %v814_v33 = vpack.i.b16 %v781_v29, %v722_v25  ;;  %v815_v34 = vshrl.u32 %v722_v25, 16  ;;  %v816_v35 = vshrl.u32 %v781_v29, 16  ;;  %v779_v36 = vcombine.high %v763_v16, %v2118_v0 }
 0x37f   : > { %v869_v23 = vsel %vm818_vm2, %v799_v19, 0  ;;  %1857 = vmatprep.subr.bf16.mxu1 %v2119_v12  ;;  %v805_v32 = vpack.i.b16 %v804_v24, %v803_v28  ;;  %v915_v37 = vsel %vm818_vm2, %v802_v26, 0  ;;  %v787_v38 = vpack.i.b16 %v786_v27, %v785_v31 }
 0x380   : > { %1852 = vmatpush3.bf16.xpose.msra.mxu0 %v869_v23  ;;  %v2357_v39 = vsel %vm1069_vm3, %v814_v33, 0  ;;  %v817_v40 = vpack.i.b16 %v816_v35, %v815_v34  ;;  %v720_v42 = vcombine.high %v704_v22, %v2118_v0  ;;  %v810_v43 = vshrl.u32 %v778_v21, 16 }
 0x381   : > { %1863 = vmatprep.subr.bf16.mxu0 %v2119_v12  ;;  %v961_v41 = vsel %vm818_vm2, %v805_v32, 0  ;;  %v808_v45 = vpack.i.b16 %v778_v21, %v719_v17  ;;  %v792_v46 = vshrl.u32 %v779_v36, 16  ;;  %v809_v47 = vshrl.u32 %v719_v17, 16 }
 0x382   : > { %v2366_v44 = vsel %vm1069_vm3, %v817_v40, 0  ;;  %v790_v48 = vpack.i.b16 %v779_v36, %v720_v42  ;;  %v791_v49 = vshrl.u32 %v720_v42, 16 }
 0x383   : > { %v811_v51 = vpack.i.b16 %v810_v43, %v809_v47  ;;  %v1071_v52 = vsel %vm1069_vm3, %v808_v45, 0 }
 0x384   : > { %v793_v53 = vpack.i.b16 %v792_v46, %v791_v49 }
 0x385   : > { %1848 = vmatmul.mubr.msk.bf16.vlgmr.msra.gmra.mrb[0].mxu1 %vm818_vm2, %v784_v30  ;;  %v1117_v54 = vsel %vm1069_vm3, %v811_v51, 0 }
 0x386   : > { %1858 = vmatpush3.bf16.xpose.msra.mxu1 %v915_v37  ;;  %1859 = vmatprep.mubr.msk.bf16.mxu1 %vm2120_vm1, %v2119_v12 }
 0x387   : > { %1854 = vmatmul.mubr.msk.bf16.vlgmr.msra.gmra.mrb[4].mxu0 %vm818_vm2, %v787_v38  ;;  %1869 = vmatprep.subr.bf16.mxu1 %v2119_v12 }
 0x388   : > { %1864 = vmatpush3.bf16.xpose.msra.mxu0 %v961_v41  ;;  %1865 = vmatprep.mubr.msk.bf16.mxu0 %vm2120_vm1, %v2119_v12 }
 0x389   : > { %1875 = vmatprep.subr.bf16.mxu0 %v2119_v12 }
 0x38d   : > { %1860 = vmatmul.mubr.msk.bf16.vlgmr.msra.gmra.mrb[4].mxu1 %vm818_vm2, %v790_v48 }
 0x38e   : > { %1870 = vmatpush3.bf16.msra.mxu1 %v1071_v52  ;;  %1871 = vmatprep.mubr.msk.bf16.mxu1 %vm2120_vm1, %v2119_v12 }
 0x38f   : > { %1866 = vmatmul.mubr.msk.bf16.vlgmr.msra.gmra.mrb[8].mxu0 %vm818_vm2, %v793_v53  ;;  %1881 = vmatprep.subr.bf16.mxu1 %v2119_v12 }
 0x390   : > { %1876 = vmatpush3.bf16.msra.mxu0 %v1117_v54  ;;  %1877 = vmatprep.mubr.msk.bf16.mxu0 %vm2120_vm1, %v2119_v12 }
 0x391   : > { %1887 = vmatprep.subr.bf16.mxu0 %v2119_v12 }
 0x458   : > { %v859_v55 = vpop.f32.mrb[0].mxu1 }
 0x459   : > { %v1003_v57 = vmul.f32 0.35355338, %v859_v55  ;;  %v1849_v58 = vpop.f32.mrb[1].mxu1 }
 0x45a   : > { %v862_v59 = vpop.f32.mrb[2].mxu1  ;;  %v905_v61 = vpop.f32.mrb[4].mxu0 }
 0x45b   : > { %v1004_v62 = vmul.f32 0.35355338, %v905_v61  ;;  %v1850_v63 = vpop.f32.mrb[3].mxu1  ;;  %v1855_v1 = vpop.f32.mrb[5].mxu0  ;;  %v1014_v4 = vadd.f32 %v1012_v56, %v1003_v57 }
 0x45c   : > { %v908_v5 = vpop.f32.mrb[6].mxu0 }
 0x45d   : > { %v1856_v6 = vpop.f32.mrb[7].mxu0  ;;  %v1018_v7 = vsel %vm818_vm2, %v1014_v4, -inf  ;;  %v1015_v8 = vadd.f32 %v1012_v56, %v1004_v62 }
 0x45e   : > { %1019 = vmax.xlane.f32.xlu1 %v1018_v7 }
 0x45f   : > { %v1021_v9 = vsel %vm818_vm2, %v1015_v8, -inf }
 0x460   : > { %v951_v10 = vpop.f32.mrb[4].mxu1  ;;  %1022 = vmax.xlane.f32.xlu0 %v1021_v9 }
 0x461   : > { %v1005_v11 = vmul.f32 0.35355338, %v951_v10  ;;  %v1861_v13 = vpop.f32.mrb[5].mxu1 }
 0x462   : > { %v954_v14 = vpop.f32.mrb[6].mxu1  ;;  %v997_v15 = vpop.f32.mrb[8].mxu0 }
 0x463   : > { %v1006_v16 = vmul.f32 0.35355338, %v997_v15  ;;  %v1862_v17 = vpop.f32.mrb[7].mxu1  ;;  %v1867_v18 = vpop.f32.mrb[9].mxu0  ;;  %v1016_v19 = vadd.f32 %v1012_v56, %v1005_v11 }
 0x464   : > { %v1000_v20 = vpop.f32.mrb[10].mxu0 }
 0x465   : > { %v1868_v21 = vpop.f32.mrb[11].mxu0  ;;  %v1024_v22 = vsel %vm818_vm2, %v1016_v19, -inf  ;;  %v1017_v23 = vadd.f32 %v1012_v56, %v1006_v16 }
 0x466   : > { %1025 = vmax.xlane.f32.xlu0 %v1024_v22 }
 0x467   : > { %v1027_v24 = vsel %vm818_vm2, %v1017_v23, -inf }
 0x468   : > { %1028 = vmax.xlane.f32.xlu1 %v1027_v24 }
 0x4eb   : > { %v1020_v25 = vpop.xlane.xlu1 %1019 }
 0x4ec   : > { %v1030_v26 = vsub.f32 %v1014_v4, %v1020_v25 }
 0x4ed   : > { %v1023_v27 = vpop.xlane.xlu0 %1022 }
 0x4ee   : > { %v1034_v28 = vmul.f32 1.442695, %v1030_v26  ;;  %v1031_v29 = vsub.f32 %v1015_v8, %v1023_v27 }
 0x4f0   : > { %2003 = vpow2.f32 %v1034_v28  ;;  %v1036_v30 = vmul.f32 1.442695, %v1031_v29 }
 0x4f2   : > { %2005 = vpow2.f32 %v1036_v30 }
 0x4f3   : > { %v1026_v31 = vpop.xlane.xlu0 %1025 }
 0x4f4   : > { %v1032_v32 = vsub.f32 %v1016_v19, %v1026_v31 }
 0x4f5   : > { %v1029_v33 = vpop.xlane.xlu1 %1028 }
 0x4f6   : > { %v1038_v34 = vmul.f32 1.442695, %v1032_v32  ;;  %v1033_v35 = vsub.f32 %v1017_v23, %v1029_v33 }
 0x4f8   : > { %2007 = vpow2.f32 %v1038_v34  ;;  %v1040_v36 = vmul.f32 1.442695, %v1033_v35 }
 0x4fa   : > { %v2004_v37 = vpop.eup %2003  ;;  %2009 = vpow2.f32 %v1040_v36 }
 0x4fb   : > { %v1042_v38 = vsel %vm818_vm2, %v2004_v37, 0.0 }
 0x4fc   : > { %v2006_v40 = vpop.eup %2005  ;;  %1043 = vadd.xlane.f32.xlu0 %v1042_v38 }
 0x4fd   : > { %v1045_v41 = vsel %vm818_vm2, %v2006_v40, 0.0 }
 0x4fe   : > { %1046 = vadd.xlane.f32.xlu1 %v1045_v41 }
 0x502   : > { %v2008_v42 = vpop.eup %2007 }
 0x503   : > { %v1048_v43 = vsel %vm818_vm2, %v2008_v42, 0.0 }
 0x504   : > { %v2010_v45 = vpop.eup %2009  ;;  %1049 = vadd.xlane.f32.xlu0 %v1048_v43 }
 0x505   : > { %v1051_v46 = vsel %vm818_vm2, %v2010_v45, 0.0 }
 0x506   : > { %1052 = vadd.xlane.f32.xlu1 %v1051_v46 }
 0x589   : > { %v1044_v47 = vpop.xlane.xlu0 %1043 }
 0x58a   : > { %2011 = vrcp.f32 %v1044_v47 }
 0x58b   : > { %v1047_v48 = vpop.xlane.xlu1 %1046 }
 0x58c   : > { %2013 = vrcp.f32 %v1047_v48 }
 0x591   : > { %v1050_v49 = vpop.xlane.xlu0 %1049 }
 0x592   : > { %2015 = vrcp.f32 %v1050_v49 }
 0x593   : > { %v1053_v51 = vpop.xlane.xlu1 %1052 }
 0x594   : > { %v2012_v52 = vpop.eup %2011  ;;  %2017 = vrcp.f32 %v1053_v51 }
 0x595   : > { %v1058_v53 = vmul.f32 %v2012_v52, %v2004_v37 }
 0x596   : > { %v2014_v54 = vpop.eup %2013 }
 0x597   : > { %v1059_v55 = vmul.f32 %v2014_v54, %v2006_v40  ;;  %v1062_v56 = vpack.c.bf16 %v1058_v53, %v1058_v53 }
 0x599   : > { %1872 = vmatmul.mubr.msk.bf16.vlgmr.msra.gmra.mrb[8].mxu1 %vm818_vm2, %v1062_v56  ;;  %v1063_v57 = vpack.c.bf16 %v1059_v55, %v1059_v55 }
 0x59a   : > { %1882 = vmatpush3.bf16.msra.mxu1 %v2357_v39  ;;  %1883 = vmatprep.mubr.msk.bf16.mxu1 %vm2120_vm1, %v2119_v12 }
 0x59b   : > { %1878 = vmatmul.mubr.msk.bf16.vlgmr.msra.gmra.mrb[12].mxu0 %vm818_vm2, %v1063_v57  ;;  %1893 = vmatprep.subr.bf16.mxu1 %v2119_v12 }
 0x59c   : > { %v2016_v58 = vpop.eup %2015  ;;  %1888 = vmatpush3.bf16.msra.mxu0 %v2366_v44  ;;  %1889 = vmatprep.mubr.msk.bf16.mxu0 %vm2120_vm1, %v2119_v12  ;;  %v1993_v44 = vld [vmem:[%s2531_s4] sm:$0xff]  }
 0x59d   : > { %v1060_v59 = vmul.f32 %v2016_v58, %v2008_v42  ;;  %1901 = vmatprep.subr.bf16.mxu0 %v2119_v12 }
 0x59e   : > { %v2018_v61 = vpop.eup %2017 }
 0x59f   : > { %v1061_v62 = vmul.f32 %v2018_v61, %v2010_v45  ;;  %v1064_v63 = vpack.c.bf16 %v1060_v59, %v1060_v59 }
 0x5a1   : > { %1884 = vmatmul.mubr.msk.bf16.vlgmr.msra.gmra.mrb[12].mxu1 %vm818_vm2, %v1064_v63  ;;  %v1065_v39 = vpack.c.bf16 %v1061_v62, %v1061_v62 }
 0x5a2   : > { %1897 = vmatprep.mubr.msk.bf16.mxu1 %vm2120_vm1, %v2119_v12  ;;  %1894 = vmatpush3.bf16.msra.mxu1 %v1993_v44 }
 0x5a3   : > { %1890 = vmatmul.mubr.msk.bf16.vlgmr.msra.gmra.mrb[16].mxu0 %vm818_vm2, %v1065_v39  ;;  %1895 = vmatprep.subr.bf16.mxu1 %v2119_v12 }
 0x5a4   : > { %1905 = vmatprep.mubr.msk.bf16.mxu0 %vm2120_vm1, %v2119_v12 }
 0x66c   : > { %v1107_v1 = vpop.f32.mrb[8].mxu1 }
 0x66d   : > { %v1873_v4 = vpop.f32.mrb[9].mxu1  ;;  %v1251_v11 = vpack.c.bf16 %v1107_v1, %v1107_v1  ;;  %v1994_v1 = vld [vmem:[%s2531_s4 + $0x8] sm:$0xff]  }
 0x66e   : > { %v1110_v5 = vpop.f32.mrb[10].mxu1  ;;  %v1153_v6 = vpop.f32.mrb[12].mxu0  ;;  %1896 = vmatpush3.bf16.msra.mxu1 %v1994_v1 }
 0x66f   : > { %v1874_v7 = vpop.f32.mrb[11].mxu1  ;;  %v1879_v8 = vpop.f32.mrb[13].mxu0  ;;  %v1285_v14 = vpack.c.bf16 %v1153_v6, %v1153_v6  ;;  %v1258_v19 = vrot.slane %v1251_v11, %v2311_v50  ;;  %1909 = vmatprep.subr.bf16.mxu1 %v2119_v12 }
 0x670   : > { %v1156_v9 = vpop.f32.mrb[14].mxu0 }
 0x671   : > { %v1880_v10 = vpop.f32.mrb[15].mxu0  ;;  %v1292_v25 = vrot.slane %v1285_v14, %v2311_v50 }
 0x674   : > { %v1199_v13 = vpop.f32.mrb[12].mxu1 }
 0x675   : > { %v1259_v15 = vpack.c.bf16 %v1199_v13, %v1199_v13  ;;  %v1885_v16 = vpop.f32.mrb[13].mxu1 }
 0x676   : > { %v1202_v17 = vpop.f32.mrb[14].mxu1  ;;  %v1245_v18 = vpop.f32.mrb[16].mxu0 }
 0x677   : > { %v1266_v20 = vrot.slane %v1259_v15, %v2311_v50  ;;  %v1293_v21 = vpack.c.bf16 %v1245_v18, %v1245_v18  ;;  %v1886_v22 = vpop.f32.mrb[15].mxu1  ;;  %v1891_v23 = vpop.f32.mrb[17].mxu0 }
 0x678   : > { %v1248_v24 = vpop.f32.mrb[18].mxu0 }
 0x679   : > { %v1267_v26 = vcombine.low %v1258_v19, %v1266_v20  ;;  %v1268_v27 = vcombine.high %v1258_v19, %v1266_v20  ;;  %v1300_v28 = vrot.slane %v1293_v21, %v2311_v50  ;;  %v1892_v29 = vpop.f32.mrb[19].mxu0  ;;  %v1787_v24 = vld [vmem:[%s2535_s8 + $0x4] ss:$0 sm:$0xff] }
 0x67b   : > { %v1275_v30 = vrot.slane %v1267_v26, %v2317_v60  ;;  %v1282_v31 = vrot.slane %v1268_v27, %v2317_v60  ;;  %v1301_v32 = vcombine.low %v1292_v25, %v1300_v28  ;;  %v1302_v33 = vcombine.high %v1292_v25, %v1300_v28 }
 0x67d   : > { %v1283_v34 = vcombine.high %v1275_v30, %v2118_v0  ;;  %v1309_v35 = vrot.slane %v1301_v32, %v2317_v60  ;;  %v1316_v36 = vrot.slane %v1302_v33, %v2317_v60  ;;  %v1284_v37 = vcombine.high %v1282_v31, %v2118_v0 }
 0x67e   : > { %v1323_v38 = vshrl.u32 %v1275_v30, 16  ;;  %v1339_v46 = vshrl.u32 %v1282_v31, 16 }
 0x67f   : > { %v1317_v40 = vcombine.high %v1309_v35, %v2118_v0  ;;  %v1318_v41 = vcombine.high %v1316_v36, %v2118_v0  ;;  %v1321_v42 = vpack.i.b16 %v1309_v35, %v1275_v30  ;;  %v1324_v43 = vshrl.u32 %v1309_v35, 16 }
 0x680   : > { %v1331_v45 = vshrl.u32 %v1283_v34, 16  ;;  %v1337_v47 = vpack.i.b16 %v1316_v36, %v1282_v31  ;;  %v1340_v48 = vshrl.u32 %v1316_v36, 16  ;;  %v1347_v54 = vshrl.u32 %v1284_v37, 16 }
 0x681   : > { %v1325_v49 = vpack.i.b16 %v1324_v43, %v1323_v38  ;;  %v1329_v51 = vpack.i.b16 %v1317_v40, %v1283_v34  ;;  %v1332_v52 = vshrl.u32 %v1317_v40, 16  ;;  %v1345_v53 = vpack.i.b16 %v1318_v41, %v1284_v37  ;;  %v1995_v38 = vld [vmem:[%s2532_s5] sm:$0xff]   ;;  %v1998_v40 = vld [vmem:[%s2534_s7 + $0x8] sm:$0xff]  }
 0x682   : > { %v1341_v55 = vpack.i.b16 %v1340_v48, %v1339_v46  ;;  %v1348_v56 = vshrl.u32 %v1318_v41, 16  ;;  %v1351_v57 = vcombine.low %v1321_v42, %v1337_v47  ;;  %1902 = vmatpush3.bf16.msra.mxu0 %v1995_v38  ;;  %v1791_v46 = vld [vmem:[%s2535_s8 + $0x2] ss:$0 sm:$0xff]  ;;  %v1792_v48 = vld [vmem:[%s2535_s8 + $0x3] ss:$0 sm:$0xff] }
 0x683   : > { %v1333_v58 = vpack.i.b16 %v1332_v52, %v1331_v45  ;;  %v1359_v59 = vcombine.low %v1329_v51, %v1345_v53  ;;  %1903 = vmatprep.subr.bf16.mxu0 %v2119_v12  ;;  %v1999_v53 = vld [vmem:[%s2534_s7 + $0x10] sm:$0xff]  }
 0x684   : > { %v1349_v61 = vpack.i.b16 %v1348_v56, %v1347_v54  ;;  %v1376_v62 = vcombine.low %v1325_v49, %v1341_v55  ;;  %v1358_v63 = vrot.slane %v1351_v57, %v2311_v50  ;;  %v2000_v54 = vld [vmem:[%s2534_s7 + $0x18] sm:$0xff]   ;;  %v1793_v55 = vld [vmem:[%s2533_s6] ss:$0 sm:$0xff] }
 0x685   : > { %v1366_v39 = vrot.slane %v1359_v59, %v2311_v50 }
 0x686   : > { %v1384_v44 = vcombine.low %v1333_v58, %v1349_v61  ;;  %v1383_v5 = vrot.slane %v1376_v62, %v2311_v50 }
 0x687   : > { %v1367_v4 = vcombine.low %v1358_v63, %v1366_v39 }
 0x688   : > { %v1391_v6 = vrot.slane %v1384_v44, %v2311_v50 }
 0x689   : > { %v1374_v7 = vrot.slane %v1367_v4, %v2317_v60 }
 0x68a   : > { %v1392_v8 = vcombine.low %v1383_v5, %v1391_v6 }
 0x68b   : > { %v1375_v10 = vcombine.high %v1374_v7, %v2118_v0  ;;  %v1404_v11 = vshrl.u32 %v1374_v7, 16 }
 0x68c   : > { %v1399_v9 = vrot.slane %v1392_v8, %v2317_v60 }
 0x68d   : > { %v1410_v18 = vshrl.u32 %v1375_v10, 16 }
 0x68e   : > { %v1405_v13 = vshrl.u32 %v1399_v9, 16  ;;  %v1400_v14 = vcombine.high %v1399_v9, %v2118_v0  ;;  %v1403_v15 = vpack.i.b16 %v1399_v9, %v1374_v7 }
 0x690   : > { %v1406_v16 = vpack.i.b16 %v1405_v13, %v1404_v11  ;;  %v1409_v17 = vpack.i.b16 %v1400_v14, %v1375_v10  ;;  %v1411_v19 = vshrl.u32 %v1400_v14, 16 }
 0x692   : > { %1413 = vrot.lane.b32.xlu0 %v1406_v16, %s2134_s16  ;;  %1415 = vrot.lane.b32.xlu1 %v1409_v17, %s2135_s17  ;;  %v1412_v50 = vpack.i.b16 %v1411_v19, %v1410_v18  ;;  %s1769_s16 = sshll.u32 %s347_s14, 3 }
 0x693   : > { %s349_s26 = scalar_lea.vmem [#allocation5], %s1769_s16  ;;  %s2053_s16 = sshll.u32 %s2137_s21, 4  ;;  %s2054_s16 = int_to_ptr.vmem [resolvable:$false] %s2053_s16 }
 0x694   : > { %s1680_s24 = sshll.u32 %s349_s26, 4  ;;  %s2055_s17 = scalar_lea.vmem %s2054_s16, 256  ;;  %s2486_s24 = int_to_ptr.vmem [resolvable:$true] %s1680_s24 }
 0x695   : > { %s2049_s23 = scalar_lea.vmem %s2486_s24, 128  ;;  %p2056_p2 = scmp.lt.s32.totalorder %s2486_s24, %s2054_s16 }
 0x696   : > { %1417 = vrot.lane.b32.xlu1 %v1412_v50, %s2136_s22  ;;  %p2050_p5 = scmp.ne.s32.totalorder %s2486_s24, %s2049_s23  ;;  %p2057_p3 = scmp.lt.s32.totalorder %s2055_s17, %s2049_s23 }
 0x698   : > { %p2051_p10 = pnand %p2050_p5, %p2547_p9  ;;  %p2058_p4 = por %p2057_p3, %p2056_p2 }
 0x69a   : > { %p2052_p12 = pneg %p2051_p10 }
 0x69c   : > { %p2059_p7 = pnand %p2058_p4, %p2052_p12 }
 0x704   : > { %v1414_v20 = vpop.permute.xlu0 %1413  ;;  %v1416_v60 = vpop.permute.xlu1 %1415 }
 0x705   : > { %v1421_v21 = vsel %vm818_vm2, %v1403_v15, %v1414_v20 }
 0x706   : > { %v1424_v22 = vsel %vm1422_vm4, %v1421_v21, %v1416_v60 }
 0x708   : > { %v1418_v0 = vpop.permute.xlu1 %1417 }
 0x709   : > { %v1427_v23 = vsel %vm1425_vm5, %v1424_v22, %v1418_v0 }
 0x70a   : > { %1898 = vmatmul.mubr.msk.bf16.vlgmr.msra.gmra.mrb[16].mxu1 %vm373_vm0, %v1427_v23 }
 0x70b   : > { %1917 = vmatprep.mubr.msk.bf16.mxu1 %vm2120_vm1, %v2119_v12 }
 0x7dd   : > { %v1484_v25 = vpop.f32.mrb[16].mxu1 }
 0x7de   : > { %v1485_v26 = vadd.f32 %v1787_v24, %v1484_v25  ;;  %v1899_v27 = vpop.f32.mrb[17].mxu1 }
 0x7df   : > { %v1487_v28 = vpop.f32.mrb[18].mxu1 }
 0x7e0   : > { %v1490_v29 = vadd.f32 %v1485_v26, %v2280_v2  ;;  %v1900_v30 = vpop.f32.mrb[19].mxu1  ;;  %v1996_v2 = vld [vmem:[%s2532_s5 + $0x8] sm:$0xff]  }
 0x7e1   : > { %1904 = vmatpush3.bf16.msra.mxu0 %v1996_v2 }
 0x7e2   : > { %v1491_v31 = vmul.f32 %v1490_v29, %v2282_v3  ;;  %v1997_v3 = vld [vmem:[%s2534_s7] sm:$0xff]  }
 0x7e3   : > { %1910 = vmatpush3.bf16.msra.mxu1 %v1997_v3 }
 0x7e4   : > { %v1492_v32 = vsel %vm373_vm0, %v1491_v31, 0.0  ;;  %1911 = vmatprep.subr.bf16.mxu1 %v2119_v12 }
 0x7e5   : > { %1493 = vadd.xlane.f32.xlu0 %v1492_v32 }
 0x7e7   : > { %1912 = vmatpush3.bf16.msra.mxu1 %v1998_v40 }
 0x7e8   : > { %1913 = vmatprep.subr.bf16.mxu1 %v2119_v12 }
 0x7eb   : > { %1914 = vmatpush3.bf16.msra.mxu1 %v1999_v53 }
 0x7ec   : > { %1915 = vmatprep.subr.bf16.mxu1 %v2119_v12  ;;  %v1797_v12 = vld [vmem:[%s2535_s8 + $0x5] ss:$0 sm:$0xff] }
 0x7ef   : > { %1916 = vmatpush3.bf16.msra.mxu1 %v2000_v54 }
 0x872   : > { %v1494_v33 = vpop.xlane.xlu0 %1493 }
 0x873   : > { %v1495_v34 = vmul.f32 0.03125, %v1494_v33 }
 0x875   : > { %v1496_v35 = vsub.f32 %v1491_v31, %v1495_v34 }
 0x877   : > { %v1497_v36 = vmul.f32 %v1496_v35, %v1496_v35 }
 0x879   : > { %v1498_v37 = vsel %vm373_vm0, %v1497_v36, 0.0 }
 0x87a   : > { %1499 = vadd.xlane.f32.xlu1 %v1498_v37 }
 0x907   : > { %v1500_v41 = vpop.xlane.xlu1 %1499 }
 0x908   : > { %v1501_v42 = vmul.f32 0.03125, %v1500_v41 }
 0x90a   : > { %v1502_v43 = vadd.f32 1e-05, %v1501_v42 }
 0x90c   : > { %2019 = vrsqrt.f32 %v1502_v43 }
 0x916   : > { %v2020_v45 = vpop.eup %2019 }
 0x917   : > { %v1504_v47 = vmul.f32 %v2020_v45, %v1496_v35 }
 0x919   : > { %v1509_v49 = vmul.f32 %v1791_v46, %v1504_v47 }
 0x91b   : > { %v1514_v51 = vadd.f32 %v1792_v48, %v1509_v49 }
 0x91d   : > { %v1515_v52 = vpack.c.bf16 %v1514_v51, %v1514_v51 }
 0x91f   : > { %1906 = vmatmul.mubr.msk.bf16.vlgmr.msra.gmra.mrb[20].mxu0 %vm373_vm0, %v1515_v52 }
 0x9f2   : > { %v1576_v56 = vpop.f32.mrb[20].mxu0 }
 0x9f3   : > { %v1577_v57 = vadd.f32 %v1793_v55, %v1576_v56  ;;  %v1907_v58 = vpop.f32.mrb[21].mxu0 }
 0x9f4   : > { %v1579_v59 = vpop.f32.mrb[22].mxu0 }
 0x9f5   : > { %v1582_v61 = vmax.f32 %v1577_v57, 0.0  ;;  %v1908_v62 = vpop.f32.mrb[23].mxu0 }
 0x9f7   : > { %v1583_v63 = vpack.c.bf16 %v1582_v61, %v1582_v61 }
 0x9f9   : > { %1918 = vmatmul.mubr.msk.bf16.vlgmr.msra.gmra.mrb[20].mxu1 %vm1620_vm6, %v1583_v63 }
 0xacc   : > { %v1658_v39 = vpop.f32.mrb[20].mxu1 }
 0xacd   : > { %v1659_v44 = vadd.f32 %v1797_v12, %v1658_v39  ;;  %v1919_v1 = vpop.f32.mrb[21].mxu1 }
 0xace   : > { %v1661_v4 = vpop.f32.mrb[22].mxu1 }
 0xacf   : > { %v1664_v5 = vadd.f32 %v1659_v44, %v1490_v29  ;;  %v1920_v6 = vpop.f32.mrb[23].mxu1 }
 0xad1   : > { %1665 = vst.msk [vmem:[%s349_s26] sm:$0xff] %vm373_vm0, %v1664_v5 }
 0xad2   : > { %2062 = shalt.err (!%p2059_p7)
}
 0xad3   : > { %s2063_s14 = scalar_lea.hbm %s2484_s29, 128  ;;  %s2067_s26 = scalar_lea.hbm %s2536_s9, 256 }
 0xad4   : > { %p2064_p8 = scmp.ne.s32.totalorder %s2484_s29, %s2063_s14  ;;  %p2068_p1 = scmp.lt.u32.totalorder %s2484_s29, %s2536_s9 }
 0xad5   : > { %p2069_p0 = scmp.lt.u32.totalorder %s2067_s26, %s2063_s14  ;;  %p2071_p5 = scmp.lt.u32.totalorder %s2063_s14, %s2484_s29 }
 0xad6   : > { %p2065_p11 = pnand %p2064_p8, %p2547_p9 }
 0xad7   : > { %p2070_p6 = por %p2069_p0, %p2068_p1 }
 0xad8   : > { %p2066_p13 = pneg %p2065_p11 }
 0xad9   : > { %p2072_p10 = por %p2071_p5, %p2070_p6 }
 0xadb   : > { %p2073_p12 = pnand %p2072_p10, %p2066_p13 }
 0xadd   : > { %2076 = shalt.err (!%p2073_p12)
}
 0xade   : > { %1925 = dma.vmem_to_hbm [thread:$0]  (%p2547_p9), %s2486_s24, 128, %s2484_s29, %s1667_s13  }
 0xadf PF: > { %p1937_p2 = scmp.ge.s32.totalorder %s2115_s12, 2  ;;  %s1692_s23 = sand.u32 1, %s2103_s30  }
 0xae0   : > { %p2548_p3 = scmp.ne.s32.totalorder %s2541_s20, 0  ;;  %s1693_s21 = scalar_lea.sflag [#allocation4], %s1692_s23 }
 0xae2   : > { %p1932_p4 = pnand %p1937_p2, %p2548_p3 }
 0xae4   : > { %2098 = dma.done.wait (!%p1932_p4), %s1693_s21, 128  }
 0xae5   : > { %2100 = vsyncadd (!%p1932_p4), %s1693_s21, 4294967168  ;;  %p20_p7 = scmp.ge.s32.totalorder %s2213_s15, 4   ;;  %s2549_s30 = smov %s2107_s10 }
 0xae6   : > { %s2550_s10 = smov %s2111_s11  ;;  %s2551_s11 = smov %s2224_s18 }
 0xae7   : > { %s2552_s12 = smov %s2213_s15  ;;  %22 = sbr.rel (!%p20_p7) target bundleno = 4 (0x4), region = 99 }
 0xaee   :  { %1698 = vsyncpa [#allocation3], 1 }
 0xaef   :  { %1700 = vsyncpa [#allocation3 + $0x1], 1 }
 0xaf0   :  { %1701 = vsyncpa [#allocation4], 1 }
 0xaf1   :  { %1703 = vsyncpa [#allocation4 + $0x1], 1 }

// kernel: tpu_custom_call.1
= control target key start
LH: loop header
LB: loop body
LE: loop exit
PB: predicated region body
PF: predicated region fallthrough
CT: control target
= control target key end

     0   :  { %14 = vsyncpa [#allocation3], 0  ;;  %s2527_s0 = inlined_call_operand.vmem [shape: f32[16,32], index: 0, kind: input, shape index: {}]   ;;  %s2528_s1 = inlined_call_operand.vmem [shape: f32[16,1], index: 1, kind: input, shape index: {}]   ;;  %s2529_s2 = inlined_call_operand.vmem [shape: bf16[32,96], index: 2, kind: input, shape index: {}]   ;;  %s2530_s3 = inlined_call_operand.hbm [shape: f32[1,96], index: 3, kind: input, shape index: {}]   ;;  %s2531_s4 = inlined_call_operand.vmem [shape: bf16[32,32], index: 4, kind: input, shape index: {}]   ;;  %s2532_s5 = inlined_call_operand.vmem [shape: bf16[32,64], index: 5, kind: input, shape index: {}]   ;;  %s2533_s6 = inlined_call_operand.vmem [shape: f32[1,64], index: 6, kind: input, shape index: {}]   ;;  %s2534_s7 = inlined_call_operand.vmem [shape: bf16[64,32], index: 7, kind: input, shape index: {}]   ;;  %s2535_s8 = inlined_call_operand.vmem [shape: f32[6,32], index: 8, kind: input, shape index: {}]   ;;  %s2536_s9 = inlined_call_operand.hbm [shape: f32[16,32], index: 9, kind: output, shape index: {}]  }
   0x1   :  { %15 = vsyncpa [#allocation4], 0 }
   0x2   :  { %17 = vsyncpa [#allocation4 + $0x1], 0  ;;  %s2188_s30 = smov 0   ;;  %s2190_s10 = smov 0  }
   0x3   :  { %s2192_s11 = smov 0   ;;  %s2194_s12 = smov 0  }
   0x4 LB: > { %s2209_s13 = sadd.s32 4294967295, %s2115_s12   ;;  %s1763_s14 = sadd.s32 4294967294, %s2115_s12   ;;  %s2115_s12 = sphi %s2194_s12, %s2552_s12   ;;  %s2111_s11 = sphi %s2192_s11, %s2551_s11   ;;  %s2107_s10 = sphi %s2190_s10, %s2550_s10   ;;  %s2103_s30 = sphi %s2188_s30, %s2549_s30  }
   0x5   : > { %s2213_s15 = sadd.s32 1, %s2115_s12   ;;  %s229_s16 = sadd.s32 1, %s2111_s11 }
   0x6   : > { %s226_s17 = ssub.s32 %s2115_s12, %s2213_s15  ;;  %p239_p0 = scmp.ne.s32.totalorder %s2111_s11, %s2107_s10 }
   0x7   : > { %p227_p1 = scmp.eq.s32.totalorder %s226_s17, 0  ;;  %p240_p2 = scmp.eq.s32.totalorder %s2209_s13, 1 }
   0x8   : > { %p245_p3 = scmp.ne.s32.totalorder %s2107_s10, %s2103_s30  ;;  %p246_p4 = scmp.eq.s32.totalorder %s1763_s14, 1 }
   0x9   : > { %s2224_s18 = scalar_select %p227_p1, %s2111_s11, %s229_s16  }
   0xa   : > { %p2226_p5 = por %p240_p2, %p239_p0  ;;  %p2230_p6 = por %p246_p4, %p245_p3 }
   0xb   : > { %p1764_p7 = scmp.ge.s32.totalorder %s2115_s12, 1  ;;  %p253_p8 = scmp.lt.s32.totalorder %s2115_s12, 3 }
   0xc   : > { %s2540_s19 = scalar_select %p2226_p5, 1, 0 }
   0xd   : > { %s2541_s20 = scalar_select %p2230_p6, 1, 0 }
   0xe   : > { %p2537_p9 = scmp.eq.s32.totalorder %s2209_s13, 0  ;;  %p2237_p10 = pnand %p1764_p7, %p253_p8 }
   0xf   : > { %s2117_s22 = smov [#allocation2]   ;;  %s2021_s27 = scalar_lea.hbm %s2530_s3, 16 }
  0x10   : > { %s2542_s21 = scalar_select %p2237_p10, 1, 0 }
  0x11   : > { %s269_s23 = sshll.u32 %s2117_s22, 4  ;;  %p1927_p11 = pneg %p2237_p10  ;;  %s270_s23 = int_to_ptr.vmem [resolvable:$true] %s269_s23 }
  0x12   : > { %p2022_p13 = scmp.ne.s32.totalorder %s2530_s3, %s2021_s27  ;;  %p2028_p3 = scmp.lt.u32.totalorder %s2021_s27, %s2530_s3 }
  0x13   : > { %p2245_p12 = pnand %p2537_p9, %p1927_p11 }
  0x15   : > { %p2023_p0 = pneg %p2245_p12 }
  0x17   : > { %p2024_p1 = pnand %p2023_p0, %p2022_p13 }
  0x19   : > { %p2025_p2 = pneg %p2024_p1 }
  0x1b   : > { %p2030_p4 = pnand %p2028_p3, %p2025_p2 }
  0x1d   : > { %2033 = shalt.err (!%p2030_p4)
}
  0x1e   : > { %s2034_s17 = scalar_lea.vmem %s270_s23, 16  ;;  %s2041_s22 = scalar_lea.vmem %s270_s23, 32 }
  0x1f   : > { %p2035_p7 = scmp.ne.s32.totalorder %s270_s23, %s2034_s17  ;;  %p2042_p9 = scmp.lt.s32.totalorder %s270_s23, %s270_s23 }
  0x20   : > { %p2043_p6 = scmp.lt.s32.totalorder %s2041_s22, %s2034_s17 }
  0x21   : > { %p2037_p8 = pnand %p2035_p7, %p2023_p0 }
  0x22   : > { %p2044_p5 = por %p2043_p6, %p2042_p9 }
  0x23   : > { %p2038_p11 = pneg %p2037_p8 }
  0x25   : > { %p2045_p10 = pnand %p2044_p5, %p2038_p11 }
  0x27   : > { %2048 = shalt.err (!%p2045_p10)
}
  0x28   : > { %1930 = dma.hbm_to_vmem [thread:$0]  (!%p2245_p12), %s2530_s3, 16, %s270_s23, [#allocation3]  }
  0x29   : > { %p2544_p13 = scmp.ne.s32.totalorder %s2542_s21, 0 }
  0x2a   : > { %p2545_p1 = scmp.eq.s32.totalorder (!%p2544_p13), %s2209_s13, 0 }
  0x2b   : > { %311 = sbr.rel (%p2544_p13) target bundleno = 2783 (0xadf), region = 56 }
  0x32   : > { %2094 = dma.done.wait (%p2545_p1), [#allocation3], 16   ;;  %p2546_p0 = pmov %p2545_p1 }
  0x33   : > { %p350_p6 = scmp.lt.s32.totalorder %s2209_s13, 1  ;;  %v2118_v0 = vmov 0   ;;  %vm373_vm0 = vcmask 261120   ;;  %v1991_v11 = vld [vmem:[%s2529_s2] sm:$0xff]   ;;  %v2119_v12 = vmov 0.0   ;;  %vm2120_vm1 = vmmov 0  }
  0x34   : > { %2096 = vsyncadd (%p2546_p0), [#allocation3], 4294967280  ;;  %1990 = vset.pattern.permute.xlu0 %v2118_v0  ;;  %1837 = vmatprep.subr.bf16.mxu0 %v2119_v12  ;;  %v1992_v13 = vld [vmem:[%s2529_s2 + $0x8] sm:$0xff]   ;;  %v1772_v18 = vld [vmem:[%s2535_s8] ss:$0 sm:$0xff]  ;;  %s2122_s21 = smov 120   ;;  %v500_v41 = vlaneseq }
  0x35   : > { %s351_s24 = scalar_select %p350_p6, %s2209_s13, 1  ;;  %1841 = vmatprep.mubr.msk.bf16.mxu0 %vm2120_vm1, %v2119_v12  ;;  %1838 = vmatpush3.bf16.msra.mxu0 %v1991_v11  ;;  %v1773_v20 = vld [vmem:[%s2535_s8 + $0x1] ss:$0 sm:$0xff]  ;;  %v1774_v24 = vld [vmem:[#allocation2] ss:$0 sm:$0xff]  ;;  %vm818_vm2 = vcmask 64512  }
  0x36   : > { %1845 = vmatprep.subr.bf16.mxu1 %v2119_v12  ;;  %1839 = vmatprep.subr.bf16.mxu0 %v2119_v12  ;;  %s2123_s14 = smov 112   ;;  %s2125_s17 = smov 96   ;;  %v2132_v39 = vmov 1983009808   ;;  %v501_v44 = vshrl.u32 %v500_v41, 7  ;;  %vm1069_vm3 = vcmask 1043456  }
  0x37   : > { %s1770_s27 = sshll.u32 %s351_s24, 3  ;;  %1847 = vmatprep.mubr.msk.bf16.mxu1 %vm2120_vm1, %v2119_v12  ;;  %s2126_s22 = smov 88   ;;  %v498_v40 = vunpack.c.l.s4 %v2132_v39  ;;  %v2133_v45 = vmov 1934713408   ;;  %vm1422_vm4 = vcmask 130048   ;;  %vm1425_vm5 = vcmask 195584  }
  0x38   : > { %s357_s23 = scalar_lea.vmem %s2528_s1, %s1770_s27  ;;  %s353_s16 = scalar_lea.vmem %s2527_s0, %s1770_s27  ;;  %v531_v46 = vunpack.c.l.s4 %v2133_v45  ;;  %vm1620_vm6 = vcmask 523264  }
  0x39   : > { %v360_v1 = vld [vmem:[%s357_s23] sm:$0xff]  ;;  %1840 = vmatpush3.bf16.msra.mxu0 %v1992_v13  ;;  %s2121_s23 = smov 80   ;;  %s2127_s25 = smov 72   ;;  %v499_v43 = vunpack.c.0.s8 %v498_v40 }
  0x3a   : > { %369 = vperm.xlu0 %1990, %v360_v1   ;;  %v2280_v2 = vld [vmem:[%s353_s16] sm:$0xff]  ;;  %1851 = vmatprep.subr.bf16.mxu0 %v2119_v12  ;;  %v1782_v26 = vadd.f32 -1.0, %v360_v1  ;;  %s2124_s16 = smov 104   ;;  %s2128_s26 = smov 64   ;;  %v532_v52 = vunpack.c.0.s8 %v531_v46 }
  0x3b   : > { %s2129_s24 = smov 56   ;;  %s2130_s27 = smov 48   ;;  %v2311_v50 = vsub.s32 %v499_v43, %v501_v44 }
  0x3c   : > { %v1008_v32 = vmul.f32 1e+09, %v1782_v26  ;;  %s2131_s28 = smov 40   ;;  %v2317_v60 = vsub.s32 %v532_v52, %v501_v44  ;;  %p2547_p9 = scmp.ne.s32.totalorder %s2540_s19, 0 }
  0xb9   : > { %v2282_v3 = vpop.permute.xlu0 %369 }
  0xba   : > { %v372_v4 = vmul.f32 %v2282_v3, %v2280_v2 }
  0xbc   : > { %v374_v5 = vsel %vm373_vm0, %v372_v4, 0.0 }
  0xbd   : > { %375 = vadd.xlane.f32.xlu0 %v374_v5 }
 0x14a   : > { %v376_v6 = vpop.xlane.xlu0 %375 }
 0x14b   : > { %v378_v7 = vmul.f32 0.03125, %v376_v6 }
 0x14d   : > { %v379_v8 = vsub.f32 %v372_v4, %v378_v7 }
 0x14f   : > { %v380_v9 = vmul.f32 %v379_v8, %v379_v8 }
 0x151   : > { %v381_v10 = vsel %vm373_vm0, %v380_v9, 0.0 }
 0x152   : > { %382 = vadd.xlane.f32.xlu1 %v381_v10 }
 0x1df   : > { %v383_v14 = vpop.xlane.xlu1 %382 }
 0x1e0   : > { %v384_v15 = vmul.f32 0.03125, %v383_v14 }
 0x1e2   : > { %v385_v16 = vadd.f32 1e-05, %v384_v15 }
 0x1e4   : > { %2001 = vrsqrt.f32 %v385_v16 }
 0x1ee   : > { %v2002_v17 = vpop.eup %2001 }
 0x1ef   : > { %v387_v19 = vmul.f32 %v2002_v17, %v379_v8 }
 0x1f1   : > { %v392_v21 = vmul.f32 %v1772_v18, %v387_v19 }
 0x1f3   : > { %v397_v22 = vadd.f32 %v1773_v20, %v392_v21 }
 0x1f5   : > { %v398_v23 = vpack.c.bf16 %v397_v22, %v397_v22 }
 0x1f7   : > { %1842 = vmatmul.mubr.msk.bf16.vlgmr.msra.gmra.mrb[0].mxu0 %vm373_vm0, %v398_v23 }
 0x1f8   : > { %1853 = vmatprep.mubr.msk.bf16.mxu0 %vm2120_vm1, %v2119_v12 }
 0x2ca   : > { %v459_v25 = vpop.f32.mrb[0].mxu0 }
 0x2cb   : > { %v460_v27 = vadd.f32 %v1774_v24, %v459_v25  ;;  %v1843_v28 = vpop.f32.mrb[1].mxu0 }
 0x2cc   : > { %v462_v29 = vpop.f32.mrb[2].mxu0 }
 0x2cd   : > { %v465_v30 = vpack.c.bf16 %v460_v27, %v460_v27  ;;  %v1844_v31 = vpop.f32.mrb[3].mxu0 }
 0x2cf   : > { %482 = vrot.lane.b32.xlu0 %v465_v30, %s2121_s23  ;;  %467 = vrot.lane.b32.xlu1 %v465_v30, %s2122_s21  ;;  %s2137_s21 = smov [#allocation5]  }
 0x2d3   : > { %1011 = vperm.xlu0 %1990, %v1008_v32   ;;  %470 = vrot.lane.b32.xlu1 %v465_v30, %s2123_s14  ;;  %s347_s14 = sand.u32 1, %s2107_s10  }
 0x2d7   : > { %473 = vrot.lane.b32.xlu1 %v465_v30, %s2124_s16  ;;  %s2134_s16 = smov 8  }
 0x2db   : > { %476 = vrot.lane.b32.xlu1 %v465_v30, %s2125_s17  ;;  %s2135_s17 = smov 16  }
 0x2df   : > { %479 = vrot.lane.b32.xlu1 %v465_v30, %s2126_s22  ;;  %s2136_s22 = smov 24  }
 0x2e3   : > { %485 = vrot.lane.b32.xlu1 %v465_v30, %s2127_s25  ;;  %s1804_s25 = sshll.u32 %s2209_s13, 7  ;;  %s1667_s13 = scalar_lea.sflag [#allocation4], %s347_s14 }
 0x2e4   : > { %s2484_s29 = scalar_lea.hbm %s2536_s9, %s1804_s25 }
 0x2e7   : > { %488 = vrot.lane.b32.xlu1 %v465_v30, %s2128_s26 }
 0x2eb   : > { %490 = vrot.lane.b32.xlu1 %v465_v30, %s2129_s24 }
 0x2ef   : > { %492 = vrot.lane.b32.xlu1 %v465_v30, %s2130_s27 }
 0x2f3   : > { %494 = vrot.lane.b32.xlu1 %v465_v30, %s2131_s28 }
 0x341   : > { %v468_v33 = vpop.permute.xlu1 %467  ;;  %v483_v48 = vpop.permute.xlu0 %482 }
 0x345   : > { %v471_v34 = vpop.permute.xlu1 %470 }
 0x346   : > { %v504_v51 = vcombine.low %v471_v34, %v483_v48 }
 0x348   : > { %v511_v57 = vrot.slane %v504_v51, %v2311_v50 }
 0x349   : > { %v474_v35 = vpop.permute.xlu1 %473 }
 0x34d   : > { %v477_v36 = vpop.permute.xlu1 %476 }
 0x34e   : > { %v496_v47 = vcombine.low %v465_v30, %v477_v36 }
 0x350   : > { %v503_v54 = vrot.slane %v496_v47, %v2311_v50 }
 0x351   : > { %v480_v37 = vpop.permute.xlu1 %479 }
 0x352   : > { %v564_v55 = vcombine.low %v468_v33, %v480_v37  ;;  %v528_v62 = vcombine.low %v503_v54, %v511_v57  ;;  %v529_v63 = vcombine.high %v503_v54, %v511_v57 }
 0x354   : > { %v571_v5 = vrot.slane %v564_v55, %v2311_v50  ;;  %v536_v14 = vrot.slane %v528_v62, %v2317_v60  ;;  %v543_v15 = vrot.slane %v529_v63, %v2317_v60 }
 0x355   : > { %v486_v38 = vpop.permute.xlu1 %485 }
 0x356   : > { %v572_v53 = vcombine.low %v474_v35, %v486_v38 }
 0x358   : > { %v579_v61 = vrot.slane %v572_v53, %v2311_v50 }
 0x359   : > { %v489_v42 = vpop.permute.xlu1 %488 }
 0x35a   : > { %v519_v58 = vrot.slane %v489_v42, %v2311_v50  ;;  %v596_v10 = vcombine.low %v571_v5, %v579_v61  ;;  %v597_v11 = vcombine.high %v571_v5, %v579_v61 }
 0x35c   : > { %v604_v22 = vrot.slane %v596_v10, %v2317_v60  ;;  %v611_v23 = vrot.slane %v597_v11, %v2317_v60 }
 0x35d   : > { %v491_v49 = vpop.permute.xlu1 %490 }
 0x35e   : > { %v587_v13 = vrot.slane %v491_v49, %v2311_v50 }
 0x361   : > { %v493_v56 = vpop.permute.xlu1 %492 }
 0x362   : > { %v527_v59 = vrot.slane %v493_v56, %v2311_v50 }
 0x364   : > { %v544_v1 = vcombine.low %v519_v58, %v527_v59  ;;  %v545_v4 = vcombine.high %v519_v58, %v527_v59 }
 0x365   : > { %v495_v6 = vpop.permute.xlu1 %494 }
 0x366   : > { %v552_v7 = vrot.slane %v544_v1, %v2317_v60  ;;  %v559_v8 = vrot.slane %v545_v4, %v2317_v60  ;;  %v595_v9 = vrot.slane %v495_v6, %v2311_v50 }
 0x368   : > { %v612_v16 = vcombine.low %v587_v13, %v595_v9  ;;  %v613_v17 = vcombine.high %v587_v13, %v595_v9  ;;  %v560_v18 = vcombine.low %v536_v14, %v552_v7  ;;  %v561_v19 = vcombine.high %v536_v14, %v552_v7 }
 0x369   : > { %v562_v20 = vcombine.low %v543_v15, %v559_v8  ;;  %v563_v21 = vcombine.high %v543_v15, %v559_v8 }
 0x36a   : > { %v620_v24 = vrot.slane %v612_v16, %v2317_v60  ;;  %v627_v25 = vrot.slane %v613_v17, %v2317_v60  ;;  %v636_v30 = vshrl.u32 %v560_v18, 16  ;;  %v644_v31 = vshrl.u32 %v561_v19, 16 }
 0x36b   : > { %v652_v32 = vshrl.u32 %v562_v20, 16  ;;  %v660_v33 = vshrl.u32 %v563_v21, 16 }
 0x36c   : > { %v628_v26 = vcombine.low %v604_v22, %v620_v24  ;;  %v629_v27 = vcombine.high %v604_v22, %v620_v24  ;;  %v630_v28 = vcombine.low %v611_v23, %v627_v25  ;;  %v631_v29 = vcombine.high %v611_v23, %v627_v25 }
 0x36e   : > { %v634_v34 = vpack.i.b16 %v628_v26, %v560_v18  ;;  %v637_v35 = vshrl.u32 %v628_v26, 16  ;;  %v642_v36 = vpack.i.b16 %v629_v27, %v561_v19  ;;  %v645_v37 = vshrl.u32 %v629_v27, 16 }
 0x36f   : > { %v650_v38 = vpack.i.b16 %v630_v28, %v562_v20  ;;  %v653_v39 = vshrl.u32 %v630_v28, 16  ;;  %v658_v40 = vpack.i.b16 %v631_v29, %v563_v21  ;;  %v661_v41 = vshrl.u32 %v631_v29, 16 }
 0x370   : > { %v638_v42 = vpack.i.b16 %v637_v35, %v636_v30  ;;  %v646_v43 = vpack.i.b16 %v645_v37, %v644_v31 }
 0x371   : > { %v654_v44 = vpack.i.b16 %v653_v39, %v652_v32  ;;  %v662_v45 = vpack.i.b16 %v661_v41, %v660_v33  ;;  %v664_v46 = vcombine.low %v634_v34, %v650_v38  ;;  %v665_v47 = vcombine.high %v634_v34, %v650_v38 }
 0x372   : > { %v680_v48 = vcombine.low %v642_v36, %v658_v40  ;;  %v681_v49 = vcombine.high %v642_v36, %v658_v40 }
 0x373   : > { %v679_v51 = vrot.slane %v665_v47, %v2311_v50  ;;  %v723_v52 = vcombine.low %v638_v42, %v654_v44  ;;  %v724_v53 = vcombine.high %v638_v42, %v654_v44  ;;  %v739_v54 = vcombine.low %v646_v43, %v662_v45 }
 0x374   : > { %v695_v55 = vrot.slane %v681_v49, %v2311_v50  ;;  %v740_v56 = vcombine.high %v646_v43, %v662_v45  ;;  %v672_v57 = vrot.slane %v664_v46, %v2311_v50  ;;  %v688_v58 = vrot.slane %v680_v48, %v2311_v50 }
 0x375   : > { %v731_v59 = vrot.slane %v723_v52, %v2311_v50  ;;  %v747_v61 = vrot.slane %v739_v54, %v2311_v50  ;;  %v738_v62 = vrot.slane %v724_v53, %v2311_v50 }
 0x376   : > { %v697_v63 = vcombine.high %v672_v57, %v688_v58  ;;  %v754_v1 = vrot.slane %v740_v56, %v2311_v50  ;;  %v712_v7 = vcombine.low %v679_v51, %v695_v55  ;;  %v696_v10 = vcombine.low %v672_v57, %v688_v58  ;;  %v1012_v56 = vpop.permute.xlu0 %1011 }
 0x377   : > { %v756_v4 = vcombine.high %v731_v59, %v747_v61  ;;  %v755_v6 = vcombine.low %v731_v59, %v747_v61 }
 0x378   : > { %v711_v5 = vrot.slane %v697_v63, %v2317_v60  ;;  %v771_v9 = vcombine.low %v738_v62, %v754_v1  ;;  %v719_v17 = vrot.slane %v712_v7, %v2317_v60  ;;  %v704_v22 = vrot.slane %v696_v10, %v2317_v60 }
 0x379   : > { %v770_v8 = vrot.slane %v756_v4, %v2317_v60  ;;  %v763_v16 = vrot.slane %v755_v6, %v2317_v60 }
 0x37a   : > { %v797_v13 = vshrl.u32 %v711_v5, 16  ;;  %v721_v20 = vcombine.high %v711_v5, %v2118_v0  ;;  %v778_v21 = vrot.slane %v771_v9, %v2317_v60  ;;  %v722_v25 = vcombine.high %v719_v17, %v2118_v0 }
 0x37b   : > { %v796_v11 = vpack.i.b16 %v770_v8, %v711_v5  ;;  %v798_v14 = vshrl.u32 %v770_v8, 16  ;;  %v780_v15 = vcombine.high %v770_v8, %v2118_v0  ;;  %v786_v27 = vshrl.u32 %v763_v16, 16 }
 0x37c   : > { %v803_v28 = vshrl.u32 %v721_v20, 16  ;;  %v781_v29 = vcombine.high %v778_v21, %v2118_v0  ;;  %v784_v30 = vpack.i.b16 %v763_v16, %v704_v22  ;;  %v785_v31 = vshrl.u32 %v704_v22, 16 }
 0x37d   : > { %v823_v18 = vsel %vm818_vm2, %v796_v11, 0  ;;  %v799_v19 = vpack.i.b16 %v798_v14, %v797_v13  ;;  %v804_v24 = vshrl.u32 %v780_v15, 16  ;;  %v802_v26 = vpack.i.b16 %v780_v15, %v721_v20 }
 0x37e   : > { %1846 = vmatpush3.bf16.xpose.msra.mxu1 %v823_v18  ;;  %v814_v33 = vpack.i.b16 %v781_v29, %v722_v25  ;;  %v815_v34 = vshrl.u32 %v722_v25, 16  ;;  %v816_v35 = vshrl.u32 %v781_v29, 16  ;;  %v779_v36 = vcombine.high %v763_v16, %v2118_v0 }
 0x37f   : > { %v869_v23 = vsel %vm818_vm2, %v799_v19, 0  ;;  %1857 = vmatprep.subr.bf16.mxu1 %v2119_v12  ;;  %v805_v32 = vpack.i.b16 %v804_v24, %v803_v28  ;;  %v915_v37 = vsel %vm818_vm2, %v802_v26, 0  ;;  %v787_v38 = vpack.i.b16 %v786_v27, %v785_v31 }
 0x380   : > { %1852 = vmatpush3.bf16.xpose.msra.mxu0 %v869_v23  ;;  %v2357_v39 = vsel %vm1069_vm3, %v814_v33, 0  ;;  %v817_v40 = vpack.i.b16 %v816_v35, %v815_v34  ;;  %v720_v42 = vcombine.high %v704_v22, %v2118_v0  ;;  %v810_v43 = vshrl.u32 %v778_v21, 16 }
 0x381   : > { %1863 = vmatprep.subr.bf16.mxu0 %v2119_v12  ;;  %v961_v41 = vsel %vm818_vm2, %v805_v32, 0  ;;  %v808_v45 = vpack.i.b16 %v778_v21, %v719_v17  ;;  %v792_v46 = vshrl.u32 %v779_v36, 16  ;;  %v809_v47 = vshrl.u32 %v719_v17, 16 }
 0x382   : > { %v2366_v44 = vsel %vm1069_vm3, %v817_v40, 0  ;;  %v790_v48 = vpack.i.b16 %v779_v36, %v720_v42  ;;  %v791_v49 = vshrl.u32 %v720_v42, 16 }
 0x383   : > { %v811_v51 = vpack.i.b16 %v810_v43, %v809_v47  ;;  %v1071_v52 = vsel %vm1069_vm3, %v808_v45, 0 }
 0x384   : > { %v793_v53 = vpack.i.b16 %v792_v46, %v791_v49 }
 0x385   : > { %1848 = vmatmul.mubr.msk.bf16.vlgmr.msra.gmra.mrb[0].mxu1 %vm818_vm2, %v784_v30  ;;  %v1117_v54 = vsel %vm1069_vm3, %v811_v51, 0 }
 0x386   : > { %1858 = vmatpush3.bf16.xpose.msra.mxu1 %v915_v37  ;;  %1859 = vmatprep.mubr.msk.bf16.mxu1 %vm2120_vm1, %v2119_v12 }
 0x387   : > { %1854 = vmatmul.mubr.msk.bf16.vlgmr.msra.gmra.mrb[4].mxu0 %vm818_vm2, %v787_v38  ;;  %1869 = vmatprep.subr.bf16.mxu1 %v2119_v12 }
 0x388   : > { %1864 = vmatpush3.bf16.xpose.msra.mxu0 %v961_v41  ;;  %1865 = vmatprep.mubr.msk.bf16.mxu0 %vm2120_vm1, %v2119_v12 }
 0x389   : > { %1875 = vmatprep.subr.bf16.mxu0 %v2119_v12 }
 0x38d   : > { %1860 = vmatmul.mubr.msk.bf16.vlgmr.msra.gmra.mrb[4].mxu1 %vm818_vm2, %v790_v48 }
 0x38e   : > { %1870 = vmatpush3.bf16.msra.mxu1 %v1071_v52  ;;  %1871 = vmatprep.mubr.msk.bf16.mxu1 %vm2120_vm1, %v2119_v12 }
 0x38f   : > { %1866 = vmatmul.mubr.msk.bf16.vlgmr.msra.gmra.mrb[8].mxu0 %vm818_vm2, %v793_v53  ;;  %1881 = vmatprep.subr.bf16.mxu1 %v2119_v12 }
 0x390   : > { %1876 = vmatpush3.bf16.msra.mxu0 %v1117_v54  ;;  %1877 = vmatprep.mubr.msk.bf16.mxu0 %vm2120_vm1, %v2119_v12 }
 0x391   : > { %1887 = vmatprep.subr.bf16.mxu0 %v2119_v12 }
 0x458   : > { %v859_v55 = vpop.f32.mrb[0].mxu1 }
 0x459   : > { %v1003_v57 = vmul.f32 0.35355338, %v859_v55  ;;  %v1849_v58 = vpop.f32.mrb[1].mxu1 }
 0x45a   : > { %v862_v59 = vpop.f32.mrb[2].mxu1  ;;  %v905_v61 = vpop.f32.mrb[4].mxu0 }
 0x45b   : > { %v1004_v62 = vmul.f32 0.35355338, %v905_v61  ;;  %v1850_v63 = vpop.f32.mrb[3].mxu1  ;;  %v1855_v1 = vpop.f32.mrb[5].mxu0  ;;  %v1014_v4 = vadd.f32 %v1012_v56, %v1003_v57 }
 0x45c   : > { %v908_v5 = vpop.f32.mrb[6].mxu0 }
 0x45d   : > { %v1856_v6 = vpop.f32.mrb[7].mxu0  ;;  %v1018_v7 = vsel %vm818_vm2, %v1014_v4, -inf  ;;  %v1015_v8 = vadd.f32 %v1012_v56, %v1004_v62 }
 0x45e   : > { %1019 = vmax.xlane.f32.xlu1 %v1018_v7 }
 0x45f   : > { %v1021_v9 = vsel %vm818_vm2, %v1015_v8, -inf }
 0x460   : > { %v951_v10 = vpop.f32.mrb[4].mxu1  ;;  %1022 = vmax.xlane.f32.xlu0 %v1021_v9 }
 0x461   : > { %v1005_v11 = vmul.f32 0.35355338, %v951_v10  ;;  %v1861_v13 = vpop.f32.mrb[5].mxu1 }
 0x462   : > { %v954_v14 = vpop.f32.mrb[6].mxu1  ;;  %v997_v15 = vpop.f32.mrb[8].mxu0 }
 0x463   : > { %v1006_v16 = vmul.f32 0.35355338, %v997_v15  ;;  %v1862_v17 = vpop.f32.mrb[7].mxu1  ;;  %v1867_v18 = vpop.f32.mrb[9].mxu0  ;;  %v1016_v19 = vadd.f32 %v1012_v56, %v1005_v11 }
 0x464   : > { %v1000_v20 = vpop.f32.mrb[10].mxu0 }
 0x465   : > { %v1868_v21 = vpop.f32.mrb[11].mxu0  ;;  %v1024_v22 = vsel %vm818_vm2, %v1016_v19, -inf  ;;  %v1017_v23 = vadd.f32 %v1012_v56, %v1006_v16 }
 0x466   : > { %1025 = vmax.xlane.f32.xlu0 %v1024_v22 }
 0x467   : > { %v1027_v24 = vsel %vm818_vm2, %v1017_v23, -inf }
 0x468   : > { %1028 = vmax.xlane.f32.xlu1 %v1027_v24 }
 0x4eb   : > { %v1020_v25 = vpop.xlane.xlu1 %1019 }
 0x4ec   : > { %v1030_v26 = vsub.f32 %v1014_v4, %v1020_v25 }
 0x4ed   : > { %v1023_v27 = vpop.xlane.xlu0 %1022 }
 0x4ee   : > { %v1034_v28 = vmul.f32 1.442695, %v1030_v26  ;;  %v1031_v29 = vsub.f32 %v1015_v8, %v1023_v27 }
 0x4f0   : > { %2003 = vpow2.f32 %v1034_v28  ;;  %v1036_v30 = vmul.f32 1.442695, %v1031_v29 }
 0x4f2   : > { %2005 = vpow2.f32 %v1036_v30 }
 0x4f3   : > { %v1026_v31 = vpop.xlane.xlu0 %1025 }
 0x4f4   : > { %v1032_v32 = vsub.f32 %v1016_v19, %v1026_v31 }
 0x4f5   : > { %v1029_v33 = vpop.xlane.xlu1 %1028 }
 0x4f6   : > { %v1038_v34 = vmul.f32 1.442695, %v1032_v32  ;;  %v1033_v35 = vsub.f32 %v1017_v23, %v1029_v33 }
 0x4f8   : > { %2007 = vpow2.f32 %v1038_v34  ;;  %v1040_v36 = vmul.f32 1.442695, %v1033_v35 }
 0x4fa   : > { %v2004_v37 = vpop.eup %2003  ;;  %2009 = vpow2.f32 %v1040_v36 }
 0x4fb   : > { %v1042_v38 = vsel %vm818_vm2, %v2004_v37, 0.0 }
 0x4fc   : > { %v2006_v40 = vpop.eup %2005  ;;  %1043 = vadd.xlane.f32.xlu0 %v1042_v38 }
 0x4fd   : > { %v1045_v41 = vsel %vm818_vm2, %v2006_v40, 0.0 }
 0x4fe   : > { %1046 = vadd.xlane.f32.xlu1 %v1045_v41 }
 0x502   : > { %v2008_v42 = vpop.eup %2007 }
 0x503   : > { %v1048_v43 = vsel %vm818_vm2, %v2008_v42, 0.0 }
 0x504   : > { %v2010_v45 = vpop.eup %2009  ;;  %1049 = vadd.xlane.f32.xlu0 %v1048_v43 }
 0x505   : > { %v1051_v46 = vsel %vm818_vm2, %v2010_v45, 0.0 }
 0x506   : > { %1052 = vadd.xlane.f32.xlu1 %v1051_v46 }
 0x589   : > { %v1044_v47 = vpop.xlane.xlu0 %1043 }
 0x58a   : > { %2011 = vrcp.f32 %v1044_v47 }
 0x58b   : > { %v1047_v48 = vpop.xlane.xlu1 %1046 }
 0x58c   : > { %2013 = vrcp.f32 %v1047_v48 }
 0x591   : > { %v1050_v49 = vpop.xlane.xlu0 %1049 }
 0x592   : > { %2015 = vrcp.f32 %v1050_v49 }
 0x593   : > { %v1053_v51 = vpop.xlane.xlu1 %1052 }
 0x594   : > { %v2012_v52 = vpop.eup %2011  ;;  %2017 = vrcp.f32 %v1053_v51 }
 0x595   : > { %v1058_v53 = vmul.f32 %v2012_v52, %v2004_v37 }
 0x596   : > { %v2014_v54 = vpop.eup %2013 }
 0x597   : > { %v1059_v55 = vmul.f32 %v2014_v54, %v2006_v40  ;;  %v1062_v56 = vpack.c.bf16 %v1058_v53, %v1058_v53 }
 0x599   : > { %1872 = vmatmul.mubr.msk.bf16.vlgmr.msra.gmra.mrb[8].mxu1 %vm818_vm2, %v1062_v56  ;;  %v1063_v57 = vpack.c.bf16 %v1059_v55, %v1059_v55 }
 0x59a   : > { %1882 = vmatpush3.bf16.msra.mxu1 %v2357_v39  ;;  %1883 = vmatprep.mubr.msk.bf16.mxu1 %vm2120_vm1, %v2119_v12 }
 0x59b   : > { %1878 = vmatmul.mubr.msk.bf16.vlgmr.msra.gmra.mrb[12].mxu0 %vm818_vm2, %v1063_v57  ;;  %1893 = vmatprep.subr.bf16.mxu1 %v2119_v12 }
 0x59c   : > { %v2016_v58 = vpop.eup %2015  ;;  %1888 = vmatpush3.bf16.msra.mxu0 %v2366_v44  ;;  %1889 = vmatprep.mubr.msk.bf16.mxu0 %vm2120_vm1, %v2119_v12  ;;  %v1993_v44 = vld [vmem:[%s2531_s4] sm:$0xff]  }
 0x59d   : > { %v1060_v59 = vmul.f32 %v2016_v58, %v2008_v42  ;;  %1901 = vmatprep.subr.bf16.mxu0 %v2119_v12 }
 0x59e   : > { %v2018_v61 = vpop.eup %2017 }
 0x59f   : > { %v1061_v62 = vmul.f32 %v2018_v61, %v2010_v45  ;;  %v1064_v63 = vpack.c.bf16 %v1060_v59, %v1060_v59 }
 0x5a1   : > { %1884 = vmatmul.mubr.msk.bf16.vlgmr.msra.gmra.mrb[12].mxu1 %vm818_vm2, %v1064_v63  ;;  %v1065_v39 = vpack.c.bf16 %v1061_v62, %v1061_v62 }
 0x5a2   : > { %1897 = vmatprep.mubr.msk.bf16.mxu1 %vm2120_vm1, %v2119_v12  ;;  %1894 = vmatpush3.bf16.msra.mxu1 %v1993_v44 }
 0x5a3   : > { %1890 = vmatmul.mubr.msk.bf16.vlgmr.msra.gmra.mrb[16].mxu0 %vm818_vm2, %v1065_v39  ;;  %1895 = vmatprep.subr.bf16.mxu1 %v2119_v12 }
 0x5a4   : > { %1905 = vmatprep.mubr.msk.bf16.mxu0 %vm2120_vm1, %v2119_v12 }
 0x66c   : > { %v1107_v1 = vpop.f32.mrb[8].mxu1 }
 0x66d   : > { %v1873_v4 = vpop.f32.mrb[9].mxu1  ;;  %v1251_v11 = vpack.c.bf16 %v1107_v1, %v1107_v1  ;;  %v1994_v1 = vld [vmem:[%s2531_s4 + $0x8] sm:$0xff]  }
 0x66e   : > { %v1110_v5 = vpop.f32.mrb[10].mxu1  ;;  %v1153_v6 = vpop.f32.mrb[12].mxu0  ;;  %1896 = vmatpush3.bf16.msra.mxu1 %v1994_v1 }
 0x66f   : > { %v1874_v7 = vpop.f32.mrb[11].mxu1  ;;  %v1879_v8 = vpop.f32.mrb[13].mxu0  ;;  %v1285_v14 = vpack.c.bf16 %v1153_v6, %v1153_v6  ;;  %v1258_v19 = vrot.slane %v1251_v11, %v2311_v50  ;;  %1909 = vmatprep.subr.bf16.mxu1 %v2119_v12 }
 0x670   : > { %v1156_v9 = vpop.f32.mrb[14].mxu0 }
 0x671   : > { %v1880_v10 = vpop.f32.mrb[15].mxu0  ;;  %v1292_v25 = vrot.slane %v1285_v14, %v2311_v50 }
 0x674   : > { %v1199_v13 = vpop.f32.mrb[12].mxu1 }
 0x675   : > { %v1259_v15 = vpack.c.bf16 %v1199_v13, %v1199_v13  ;;  %v1885_v16 = vpop.f32.mrb[13].mxu1 }
 0x676   : > { %v1202_v17 = vpop.f32.mrb[14].mxu1  ;;  %v1245_v18 = vpop.f32.mrb[16].mxu0 }
 0x677   : > { %v1266_v20 = vrot.slane %v1259_v15, %v2311_v50  ;;  %v1293_v21 = vpack.c.bf16 %v1245_v18, %v1245_v18  ;;  %v1886_v22 = vpop.f32.mrb[15].mxu1  ;;  %v1891_v23 = vpop.f32.mrb[17].mxu0 }
 0x678   : > { %v1248_v24 = vpop.f32.mrb[18].mxu0 }
 0x679   : > { %v1267_v26 = vcombine.low %v1258_v19, %v1266_v20  ;;  %v1268_v27 = vcombine.high %v1258_v19, %v1266_v20  ;;  %v1300_v28 = vrot.slane %v1293_v21, %v2311_v50  ;;  %v1892_v29 = vpop.f32.mrb[19].mxu0  ;;  %v1787_v24 = vld [vmem:[%s2535_s8 + $0x4] ss:$0 sm:$0xff] }
 0x67b   : > { %v1275_v30 = vrot.slane %v1267_v26, %v2317_v60  ;;  %v1282_v31 = vrot.slane %v1268_v27, %v2317_v60  ;;  %v1301_v32 = vcombine.low %v1292_v25, %v1300_v28  ;;  %v1302_v33 = vcombine.high %v1292_v25, %v1300_v28 }
 0x67d   : > { %v1283_v34 = vcombine.high %v1275_v30, %v2118_v0  ;;  %v1309_v35 = vrot.slane %v1301_v32, %v2317_v60  ;;  %v1316_v36 = vrot.slane %v1302_v33, %v2317_v60  ;;  %v1284_v37 = vcombine.high %v1282_v31, %v2118_v0 }
 0x67e   : > { %v1323_v38 = vshrl.u32 %v1275_v30, 16  ;;  %v1339_v46 = vshrl.u32 %v1282_v31, 16 }
 0x67f   : > { %v1317_v40 = vcombine.high %v1309_v35, %v2118_v0  ;;  %v1318_v41 = vcombine.high %v1316_v36, %v2118_v0  ;;  %v1321_v42 = vpack.i.b16 %v1309_v35, %v1275_v30  ;;  %v1324_v43 = vshrl.u32 %v1309_v35, 16 }
 0x680   : > { %v1331_v45 = vshrl.u32 %v1283_v34, 16  ;;  %v1337_v47 = vpack.i.b16 %v1316_v36, %v1282_v31  ;;  %v1340_v48 = vshrl.u32 %v1316_v36, 16  ;;  %v1347_v54 = vshrl.u32 %v1284_v37, 16 }
 0x681   : > { %v1325_v49 = vpack.i.b16 %v1324_v43, %v1323_v38  ;;  %v1329_v51 = vpack.i.b16 %v1317_v40, %v1283_v34  ;;  %v1332_v52 = vshrl.u32 %v1317_v40, 16  ;;  %v1345_v53 = vpack.i.b16 %v1318_v41, %v1284_v37  ;;  %v1995_v38 = vld [vmem:[%s2532_s5] sm:$0xff]   ;;  %v1998_v40 = vld [vmem:[%s2534_s7 + $0x8] sm:$0xff]  }
 0x682   : > { %v1341_v55 = vpack.i.b16 %v1340_v48, %v1339_v46  ;;  %v1348_v56 = vshrl.u32 %v1318_v41, 16  ;;  %v1351_v57 = vcombine.low %v1321_v42, %v1337_v47  ;;  %1902 = vmatpush3.bf16.msra.mxu0 %v1995_v38  ;;  %v1791_v46 = vld [vmem:[%s2535_s8 + $0x2] ss:$0 sm:$0xff]  ;;  %v1792_v48 = vld [vmem:[%s2535_s8 + $0x3] ss:$0 sm:$0xff] }
 0x683   : > { %v1333_v58 = vpack.i.b16 %v1332_v52, %v1331_v45  ;;  %v1359_v59 = vcombine.low %v1329_v51, %v1345_v53  ;;  %1903 = vmatprep.subr.bf16.mxu0 %v2119_v12  ;;  %v1999_v53 = vld [vmem:[%s2534_s7 + $0x10] sm:$0xff]  }
 0x684   : > { %v1349_v61 = vpack.i.b16 %v1348_v56, %v1347_v54  ;;  %v1376_v62 = vcombine.low %v1325_v49, %v1341_v55  ;;  %v1358_v63 = vrot.slane %v1351_v57, %v2311_v50  ;;  %v2000_v54 = vld [vmem:[%s2534_s7 + $0x18] sm:$0xff]   ;;  %v1793_v55 = vld [vmem:[%s2533_s6] ss:$0 sm:$0xff] }
 0x685   : > { %v1366_v39 = vrot.slane %v1359_v59, %v2311_v50 }
 0x686   : > { %v1384_v44 = vcombine.low %v1333_v58, %v1349_v61  ;;  %v1383_v5 = vrot.slane %v1376_v62, %v2311_v50 }
 0x687   : > { %v1367_v4 = vcombine.low %v1358_v63, %v1366_v39 }
 0x688   : > { %v1391_v6 = vrot.slane %v1384_v44, %v2311_v50 }
 0x689   : > { %v1374_v7 = vrot.slane %v1367_v4, %v2317_v60 }
 0x68a   : > { %v1392_v8 = vcombine.low %v1383_v5, %v1391_v6 }
 0x68b   : > { %v1375_v10 = vcombine.high %v1374_v7, %v2118_v0  ;;  %v1404_v11 = vshrl.u32 %v1374_v7, 16 }
 0x68c   : > { %v1399_v9 = vrot.slane %v1392_v8, %v2317_v60 }
 0x68d   : > { %v1410_v18 = vshrl.u32 %v1375_v10, 16 }
 0x68e   : > { %v1405_v13 = vshrl.u32 %v1399_v9, 16  ;;  %v1400_v14 = vcombine.high %v1399_v9, %v2118_v0  ;;  %v1403_v15 = vpack.i.b16 %v1399_v9, %v1374_v7 }
 0x690   : > { %v1406_v16 = vpack.i.b16 %v1405_v13, %v1404_v11  ;;  %v1409_v17 = vpack.i.b16 %v1400_v14, %v1375_v10  ;;  %v1411_v19 = vshrl.u32 %v1400_v14, 16 }
 0x692   : > { %1413 = vrot.lane.b32.xlu0 %v1406_v16, %s2134_s16  ;;  %1415 = vrot.lane.b32.xlu1 %v1409_v17, %s2135_s17  ;;  %v1412_v50 = vpack.i.b16 %v1411_v19, %v1410_v18  ;;  %s1769_s16 = sshll.u32 %s347_s14, 3 }
 0x693   : > { %s349_s26 = scalar_lea.vmem [#allocation5], %s1769_s16  ;;  %s2053_s16 = sshll.u32 %s2137_s21, 4  ;;  %s2054_s16 = int_to_ptr.vmem [resolvable:$false] %s2053_s16 }
 0x694   : > { %s1680_s24 = sshll.u32 %s349_s26, 4  ;;  %s2055_s17 = scalar_lea.vmem %s2054_s16, 256  ;;  %s2486_s24 = int_to_ptr.vmem [resolvable:$true] %s1680_s24 }
 0x695   : > { %s2049_s23 = scalar_lea.vmem %s2486_s24, 128  ;;  %p2056_p2 = scmp.lt.s32.totalorder %s2486_s24, %s2054_s16 }
 0x696   : > { %1417 = vrot.lane.b32.xlu1 %v1412_v50, %s2136_s22  ;;  %p2050_p5 = scmp.ne.s32.totalorder %s2486_s24, %s2049_s23  ;;  %p2057_p3 = scmp.lt.s32.totalorder %s2055_s17, %s2049_s23 }
 0x698   : > { %p2051_p10 = pnand %p2050_p5, %p2547_p9  ;;  %p2058_p4 = por %p2057_p3, %p2056_p2 }
 0x69a   : > { %p2052_p12 = pneg %p2051_p10 }
 0x69c   : > { %p2059_p7 = pnand %p2058_p4, %p2052_p12 }
 0x704   : > { %v1414_v20 = vpop.permute.xlu0 %1413  ;;  %v1416_v60 = vpop.permute.xlu1 %1415 }
 0x705   : > { %v1421_v21 = vsel %vm818_vm2, %v1403_v15, %v1414_v20 }
 0x706   : > { %v1424_v22 = vsel %vm1422_vm4, %v1421_v21, %v1416_v60 }
 0x708   : > { %v1418_v0 = vpop.permute.xlu1 %1417 }
 0x709   : > { %v1427_v23 = vsel %vm1425_vm5, %v1424_v22, %v1418_v0 }
 0x70a   : > { %1898 = vmatmul.mubr.msk.bf16.vlgmr.msra.gmra.mrb[16].mxu1 %vm373_vm0, %v1427_v23 }
 0x70b   : > { %1917 = vmatprep.mubr.msk.bf16.mxu1 %vm2120_vm1, %v2119_v12 }
 0x7dd   : > { %v1484_v25 = vpop.f32.mrb[16].mxu1 }
 0x7de   : > { %v1485_v26 = vadd.f32 %v1787_v24, %v1484_v25  ;;  %v1899_v27 = vpop.f32.mrb[17].mxu1 }
 0x7df   : > { %v1487_v28 = vpop.f32.mrb[18].mxu1 }
 0x7e0   : > { %v1490_v29 = vadd.f32 %v1485_v26, %v2280_v2  ;;  %v1900_v30 = vpop.f32.mrb[19].mxu1  ;;  %v1996_v2 = vld [vmem:[%s2532_s5 + $0x8] sm:$0xff]  }
 0x7e1   : > { %1904 = vmatpush3.bf16.msra.mxu0 %v1996_v2 }
 0x7e2   : > { %v1491_v31 = vmul.f32 %v1490_v29, %v2282_v3  ;;  %v1997_v3 = vld [vmem:[%s2534_s7] sm:$0xff]  }
 0x7e3   : > { %1910 = vmatpush3.bf16.msra.mxu1 %v1997_v3 }
 0x7e4   : > { %v1492_v32 = vsel %vm373_vm0, %v1491_v31, 0.0  ;;  %1911 = vmatprep.subr.bf16.mxu1 %v2119_v12 }
 0x7e5   : > { %1493 = vadd.xlane.f32.xlu0 %v1492_v32 }
 0x7e7   : > { %1912 = vmatpush3.bf16.msra.mxu1 %v1998_v40 }
 0x7e8   : > { %1913 = vmatprep.subr.bf16.mxu1 %v2119_v12 }
 0x7eb   : > { %1914 = vmatpush3.bf16.msra.mxu1 %v1999_v53 }
 0x7ec   : > { %1915 = vmatprep.subr.bf16.mxu1 %v2119_v12  ;;  %v1797_v12 = vld [vmem:[%s2535_s8 + $0x5] ss:$0 sm:$0xff] }
 0x7ef   : > { %1916 = vmatpush3.bf16.msra.mxu1 %v2000_v54 }
 0x872   : > { %v1494_v33 = vpop.xlane.xlu0 %1493 }
 0x873   : > { %v1495_v34 = vmul.f32 0.03125, %v1494_v33 }
 0x875   : > { %v1496_v35 = vsub.f32 %v1491_v31, %v1495_v34 }
 0x877   : > { %v1497_v36 = vmul.f32 %v1496_v35, %v1496_v35 }
 0x879   : > { %v1498_v37 = vsel %vm373_vm0, %v1497_v36, 0.0 }
 0x87a   : > { %1499 = vadd.xlane.f32.xlu1 %v1498_v37 }
 0x907   : > { %v1500_v41 = vpop.xlane.xlu1 %1499 }
 0x908   : > { %v1501_v42 = vmul.f32 0.03125, %v1500_v41 }
 0x90a   : > { %v1502_v43 = vadd.f32 1e-05, %v1501_v42 }
 0x90c   : > { %2019 = vrsqrt.f32 %v1502_v43 }
 0x916   : > { %v2020_v45 = vpop.eup %2019 }
 0x917   : > { %v1504_v47 = vmul.f32 %v2020_v45, %v1496_v35 }
 0x919   : > { %v1509_v49 = vmul.f32 %v1791_v46, %v1504_v47 }
 0x91b   : > { %v1514_v51 = vadd.f32 %v1792_v48, %v1509_v49 }
 0x91d   : > { %v1515_v52 = vpack.c.bf16 %v1514_v51, %v1514_v51 }
 0x91f   : > { %1906 = vmatmul.mubr.msk.bf16.vlgmr.msra.gmra.mrb[20].mxu0 %vm373_vm0, %v1515_v52 }
 0x9f2   : > { %v1576_v56 = vpop.f32.mrb[20].mxu0 }
 0x9f3   : > { %v1577_v57 = vadd.f32 %v1793_v55, %v1576_v56  ;;  %v1907_v58 = vpop.f32.mrb[21].mxu0 }
 0x9f4   : > { %v1579_v59 = vpop.f32.mrb[22].mxu0 }
 0x9f5   : > { %v1582_v61 = vmax.f32 %v1577_v57, 0.0  ;;  %v1908_v62 = vpop.f32.mrb[23].mxu0 }
 0x9f7   : > { %v1583_v63 = vpack.c.bf16 %v1582_v61, %v1582_v61 }
 0x9f9   : > { %1918 = vmatmul.mubr.msk.bf16.vlgmr.msra.gmra.mrb[20].mxu1 %vm1620_vm6, %v1583_v63 }
 0xacc   : > { %v1658_v39 = vpop.f32.mrb[20].mxu1 }
 0xacd   : > { %v1659_v44 = vadd.f32 %v1797_v12, %v1658_v39  ;;  %v1919_v1 = vpop.f32.mrb[21].mxu1 }
 0xace   : > { %v1661_v4 = vpop.f32.mrb[22].mxu1 }
 0xacf   : > { %v1664_v5 = vadd.f32 %v1659_v44, %v1490_v29  ;;  %v1920_v6 = vpop.f32.mrb[23].mxu1 }
 0xad1   : > { %1665 = vst.msk [vmem:[%s349_s26] sm:$0xff] %vm373_vm0, %v1664_v5 }
 0xad2   : > { %2062 = shalt.err (!%p2059_p7)
}
 0xad3   : > { %s2063_s14 = scalar_lea.hbm %s2484_s29, 128  ;;  %s2067_s26 = scalar_lea.hbm %s2536_s9, 256 }
 0xad4   : > { %p2064_p8 = scmp.ne.s32.totalorder %s2484_s29, %s2063_s14  ;;  %p2068_p1 = scmp.lt.u32.totalorder %s2484_s29, %s2536_s9 }
 0xad5   : > { %p2069_p0 = scmp.lt.u32.totalorder %s2067_s26, %s2063_s14  ;;  %p2071_p5 = scmp.lt.u32.totalorder %s2063_s14, %s2484_s29 }
 0xad6   : > { %p2065_p11 = pnand %p2064_p8, %p2547_p9 }
 0xad7   : > { %p2070_p6 = por %p2069_p0, %p2068_p1 }
 0xad8   : > { %p2066_p13 = pneg %p2065_p11 }
 0xad9   : > { %p2072_p10 = por %p2071_p5, %p2070_p6 }
 0xadb   : > { %p2073_p12 = pnand %p2072_p10, %p2066_p13 }
 0xadd   : > { %2076 = shalt.err (!%p2073_p12)
}
 0xade   : > { %1925 = dma.vmem_to_hbm [thread:$0]  (%p2547_p9), %s2486_s24, 128, %s2484_s29, %s1667_s13  }
 0xadf PF: > { %p1937_p2 = scmp.ge.s32.totalorder %s2115_s12, 2  ;;  %s1692_s23 = sand.u32 1, %s2103_s30  }
 0xae0   : > { %p2548_p3 = scmp.ne.s32.totalorder %s2541_s20, 0  ;;  %s1693_s21 = scalar_lea.sflag [#allocation4], %s1692_s23 }
 0xae2   : > { %p1932_p4 = pnand %p1937_p2, %p2548_p3 }
 0xae4   : > { %2098 = dma.done.wait (!%p1932_p4), %s1693_s21, 128  }
 0xae5   : > { %2100 = vsyncadd (!%p1932_p4), %s1693_s21, 4294967168  ;;  %p20_p7 = scmp.ge.s32.totalorder %s2213_s15, 4   ;;  %s2549_s30 = smov %s2107_s10 }
 0xae6   : > { %s2550_s10 = smov %s2111_s11  ;;  %s2551_s11 = smov %s2224_s18 }
 0xae7   : > { %s2552_s12 = smov %s2213_s15  ;;  %22 = sbr.rel (!%p20_p7) target bundleno = 4 (0x4), region = 99 }
 0xaee   :  { %1698 = vsyncpa [#allocation3], 1 }
 0xaef   :  { %1700 = vsyncpa [#allocation3 + $0x1], 1 }
 0xaf0   :  { %1701 = vsyncpa [#allocation4], 1 }
 0xaf1   :  { %1703 = vsyncpa [#allocation4 + $0x1], 1 }

</bundles_post_ra>
